<compile_context>
chip_gen: v5e
topology: v5e:2x2
jax: 0.10.0
libtpu: 0.0.40
codegen_flags: <defaults>
</compile_context>

<pallas_src>
import functools
import math

import jax
import jax.numpy as jnp
from jax.experimental import pallas as pl
from jax.experimental.pallas import tpu as pltpu


# ------------------------------- constants ----------------------------------

IN_CHANNELS = 4                                   # len(in_channels)+cell+nuclei
STAGE_CHANNELS = [8, 16, 32, 64, 128]             # scaled-down 64/256/512/1024/2048
STAGE_STRIDES = [4, 1, 2, 2, 1, 1]                # stage1 = conv(s2)+maxpool(s2); head s1
NUM_CLASSES = 19
BN_EPS = 1e-5

_LANE = 128
_ROW_ALIGN = 16                                   # bf16 packs 2 rows / sublane


def _round_up(v, m):
    return ((v + m - 1) // m) * m


def _cdiv(a, b):
    return -(-a // b)


def _vmem_info():
    """(scoped VMEM limit to request, physical VMEM capacity) in bytes."""
    cap = 64 * 1024 * 1024                        # conservative default (v7x)
    try:
        cap = int(getattr(pltpu.get_tpu_info(), "vmem_capacity_bytes", cap))
    except Exception:
        pass
    limit = min(cap * 3 // 4, 96 * 1024 * 1024)
    return limit, cap


# --------------------------- parameter folding --------------------------------

def _fold_layers(params, stage_ids):
    """Per layer: BN-scale-folded transposed weight (fp32), bias (or None),
    relu flag, true cout."""
    wts, biases, relus, couts = [], [], [], []
    for s in stage_ids:
        if s < 5:
            p = params['stages'][s]
            scale = p['gamma'] / jnp.sqrt(p['var'] + BN_EPS)
            wts.append(p['w'].T * scale[None, :])      # fold scale into weight cols (fp32)
            biases.append(p['beta'] - p['mean'] * scale)
            relus.append(True)
            couts.append(p['w'].shape[0])
        else:
            wts.append(params['classifier_w'].T)        # classifier: no BN / ReLU / bias
            biases.append(None)
            relus.append(False)
            couts.append(params['classifier_w'].shape[0])
    return wts, biases, relus, couts


# ----------------------- fused per-resolution chain call ----------------------

def _chain_group_call(x_rows, w_pads, b_pads, relu_flags, cpads, out_local_ids, rows):
    """Run pointwise layers 0..len(w_pads)-1 fused over a row-tiled grid.
    Emits outputs for `out_local_ids` (bf16 for ReLU stages, fp32 classifier)."""
    n_layers = len(w_pads)
    cin_pad = cpads[0]
    out_ids = sorted(out_local_ids)
    bias_ids = [li for li in range(n_layers) if relu_flags[li]]

    vmem_limit, vmem_cap = _vmem_info()

    # ---- VMEM-aware row-block sizing (16-row aligned for bf16 packing) ------
    w_bytes = sum(wp.shape[0] * wp.shape[1] * 2 for wp in w_pads)      # bf16
    per_row = 2 * cin_pad * 2                                          # input, dbl-buffered
    for li in out_ids:
        per_row += 2 * cpads[li + 1] * (2 if relu_flags[li] else 4)    # outputs
    per_row += 8 * max(cpads)                                          # fp32 temps headroom
    budget = max(vmem_limit - 2 * w_bytes - (2 << 20), 1 << 20)
    rb_cap = max(_ROW_ALIGN, (budget // per_row) // _ROW_ALIGN * _ROW_ALIGN)

    base_rows = 1024 if vmem_cap >= (96 << 20) else 512   # smaller tiles on v7x (64 MiB)
    rows_a = _round_up(rows, _ROW_ALIGN)
    rb = min(base_rows, rb_cap, rows_a)
    if rows_a >= 2 * _ROW_ALIGN:
        # force grid >= 2 so the 'parallel' axis can shard over v7x's 2 TensorCores
        rb = min(rb, _round_up(_cdiv(rows_a, 2), _ROW_ALIGN))
    rb = _round_up(rb, _ROW_ALIGN)
    grid = _cdiv(rows_a, rb)
    rows_pad = rb * grid

    xg = jnp.pad(x_rows, ((0, rows_pad - rows), (0, cin_pad - x_rows.shape[1])))

    omap = {li: k for k, li in enumerate(out_ids)}
    bmap = {li: k for k, li in enumerate(bias_ids)}

    def kernel(*refs):
        x_ref = refs[0]
        w_refs = refs[1:1 + n_layers]
        b_refs = refs[1 + n_layers:1 + n_layers + len(bias_ids)]
        out_refs = refs[1 + n_layers + len(bias_ids):]
        a = x_ref[...]                                           # bf16 (rb, cin_pad)
        for li in range(n_layers):
            y = jnp.dot(a, w_refs[li][...], preferred_element_type=jnp.float32)
            if relu_flags[li]:
                y = jnp.maximum(y + b_refs[bmap[li]][...], 0.0)  # BN scale already folded
            a = y.astype(jnp.bfloat16)                           # next operand / bf16 store
            if li in omap:
                out_refs[omap[li]][...] = a if relu_flags[li] else y

    in_specs = [pl.BlockSpec((rb, cin_pad), lambda i: (i, 0))]
    for li in range(n_layers):
        # grid-invariant operands: constant index_map -> DMA'd once, never refetched
        in_specs.append(pl.BlockSpec(w_pads[li].shape, lambda i: (0, 0)))
    for li in bias_ids:
        in_specs.append(pl.BlockSpec((1, cpads[li + 1]), lambda i: (0, 0)))

    out_shapes, out_specs = [], []
    for li in out_ids:
        co_pad = cpads[li + 1]
        dt = jnp.bfloat16 if relu_flags[li] else jnp.float32
        out_shapes.append(jax.ShapeDtypeStruct((rows_pad, co_pad), dt))
        out_specs.append(pl.BlockSpec((rb, co_pad), lambda i: (i, 0)))

    outs = pl.pallas_call(
        kernel,
        out_shape=tuple(out_shapes),
        grid=(grid,),
        in_specs=in_specs,
        out_specs=tuple(out_specs),
        compiler_params=pltpu.CompilerParams(
            dimension_semantics=("parallel",),
            vmem_limit_bytes=vmem_limit),
    )(xg, *w_pads, *[b_pads[li] for li in bias_ids])

    return {li: outs[omap[li]] for li in out_ids}


def _run_stage_chain(x_nchw, params, stage_ids):
    """Run a contiguous sub-chain of the 6 pointwise layers.  Each resolution
    group gets its own fused pallas_call (large-M matmuls); activations only
    hit HBM at stage outputs the module returns.  Returns {stage_id: NCHW f32}."""
    n, cin, h, w = x_nchw.shape
    xt = jnp.transpose(x_nchw, (0, 2, 3, 1)).astype(jnp.bfloat16)   # NHWC, once per chain

    wts, biases, relu_flags, couts = _fold_layers(params, stage_ids)

    # per-stage channel padding (no global max-pad)
    cpads = [_round_up(cin, _LANE)] + [_round_up(c, _LANE) for c in couts]
    w_pads, b_pads = [], []
    for li in range(len(stage_ids)):
        ci_p, co_p = cpads[li], cpads[li + 1]
        wt = wts[li]
        wp = jnp.zeros((ci_p, co_p), jnp.float32).at[:wt.shape[0], :wt.shape[1]].set(wt)
        w_pads.append(wp.astype(jnp.bfloat16))
        if relu_flags[li]:
            bp = jnp.zeros((1, co_p), jnp.float32).at[0, :couts[li]].set(biases[li])
            b_pads.append(bp)
        else:
            b_pads.append(None)

    # group consecutive stages by cumulative stride (resolution).  Stages are
    # pointwise, so strided output == chain re-applied to strided input rows.
    groups, cum = [], 1
    for li, s in enumerate(stage_ids):
        cum *= STAGE_STRIDES[s]
        if groups and groups[-1][0] == cum:
            groups[-1][1].append(li)
        else:
            groups.append((cum, [li]))

    result = {}
    for cum_g, local_ids in groups:
        hs, ws = _cdiv(h, cum_g), _cdiv(w, cum_g)
        rows = n * hs * ws
        depth = local_ids[-1] + 1                    # chain prefix length for this group
        xg = xt[:, ::cum_g, ::cum_g, :].reshape(rows, cin)
        outs = _chain_group_call(xg, w_pads[:depth], b_pads[:depth],
                                 relu_flags[:depth], cpads[:depth + 1],
                                 local_ids, rows)
        for li in local_ids:
            co = couts[li]
            y = outs[li][:rows, :co].astype(jnp.float32).reshape(n, hs, ws, co)
            result[stage_ids[li]] = jnp.transpose(y, (0, 3, 1, 2))   # back to NCHW
    return result


# --------------------------- global average pooling --------------------------

def _gap_kernel(x_ref, o_ref, acc_ref, *, inv_s):
    @pl.when(pl.program_id(1) == 0)
    def _():
        acc_ref[...] = jnp.zeros_like(acc_ref)

    acc_ref[...] += jnp.sum(x_ref[...].astype(jnp.float32), axis=1)

    @pl.when(pl.program_id(1) == pl.num_programs(1) - 1)
    def _():
        o_ref[...] = acc_ref[...] * inv_s


def global_average_pooling_2d(x, keepdims=False):
    """torch.mean(x.view(N, C, -1), -1)   (ABC_Model.global_average_pooling_2d)."""
    n, c, h, w = x.shape
    s = h * w
    c_pad = _round_up(c, _LANE)
    n_pad = _round_up(n, 8)
    bn = 8

    # tile the spatial (reduction) axis so a block stays a few MiB, never blows VMEM
    itemsize = jnp.dtype(x.dtype).itemsize
    sb_cap = max(8, ((4 << 20) // (bn * c_pad * itemsize * 2)) // 8 * 8)
    sb = min(_round_up(s, 8), sb_cap)
    s_pad = _round_up(s, sb)

    xs = jnp.transpose(x, (0, 2, 3, 1)).reshape(n, s, c)
    xs = jnp.pad(xs, ((0, n_pad - n), (0, s_pad - s), (0, c_pad - c)))

    out = pl.pallas_call(
        functools.partial(_gap_kernel, inv_s=1.0 / s),
        out_shape=jax.ShapeDtypeStruct((n_pad, c_pad), jnp.float32),
        grid=(n_pad // bn, s_pad // sb),
        in_specs=[pl.BlockSpec((bn, sb, c_pad), lambda i, j: (i, j, 0))],
        out_specs=pl.BlockSpec((bn, c_pad), lambda i, j: (i, 0)),
        scratch_shapes=[pltpu.VMEM((bn, c_pad), jnp.float32)],
        compiler_params=pltpu.CompilerParams(
            dimension_semantics=("parallel", "arbitrary")),
    )(xs)
    out = out[:n, :c]
    if keepdims:
        out = out.reshape(n, c, 1, 1)
    return out


# ------------------------- PuzzleCAM tile / merge (glue) ---------------------

def tile_features(features, num_pieces):
    npl = int(math.sqrt(num_pieces))
    n, c, h, w = features.shape
    hp, wp = h // npl, w // npl
    f = features.reshape(n, c, npl, hp, npl, wp)
    f = jnp.transpose(f, (2, 4, 0, 1, 3, 5))            # (row, col, N, C, hp, wp)
    return f.reshape(npl * npl * n, c, hp, wp)


def merge_features(features, num_pieces, batch_size):
    npl = int(math.sqrt(num_pieces))
    _, c, h, w = features.shape
    f = features.reshape(npl, npl, batch_size, c, h, w)
    f = jnp.transpose(f, (2, 3, 0, 4, 1, 5))             # (N, C, row, h, col, w)
    return f.reshape(batch_size, c, npl * h, npl * w)


# ------------------------------ model definition -----------------------------

def init_params(key):
    params = {'stages': []}
    chans = [IN_CHANNELS] + STAGE_CHANNELS
    for i in range(5):
        cin, cout = chans[i], chans[i + 1]
        key, k1, k2, k3, k4, k5 = jax.random.split(key, 6)
        params['stages'].append(dict(
            w=jax.random.normal(k1, (cout, cin), jnp.float32) / math.sqrt(cin),
            gamma=1.0 + 0.1 * jax.random.normal(k2, (cout,), jnp.float32),
            beta=0.1 * jax.random.normal(k3, (cout,), jnp.float32),
            mean=0.1 * jax.random.normal(k4, (cout,), jnp.float32),
            var=0.5 + jnp.abs(jax.random.normal(k5, (cout,), jnp.float32)),
        ))
    key, kc = jax.random.split(key)
    params['classifier_w'] = 0.02 * jax.random.normal(
        kc, (NUM_CLASSES, STAGE_CHANNELS[-1]), jnp.float32)
    return params


def classifier_for_puzzle_forward(params, x, num_pieces=1, level=-1):
    batch_size = x.shape[0]
    output_dic = {}
    n_layers = 6

    tile_here = isinstance(level, int) and 1 <= level <= n_layers
    pre_ids = list(range(level - 1)) if tile_here else []
    post_ids = list(range(level - 1, n_layers)) if tile_here else list(range(n_layers))

    cur = x
    if pre_ids:                                  # layers before the tiling point
        pre_out = _run_stage_chain(cur, params, pre_ids)
        for s in pre_ids:
            output_dic['stage%d' % (s + 1)] = pre_out[s]
        cur = pre_out[pre_ids[-1]]
    if tile_here:
        cur = tile_features(cur, num_pieces)
    post_out = _run_stage_chain(cur, params, post_ids)
    for s in post_ids:
        output_dic['stage%d' % (s + 1)] = post_out[s]

    output_dic['logits'] = global_average_pooling_2d(output_dic['stage6'])

    for l in range(n_layers):
        l += 1
        if l >= level:
            output_dic['stage%d' % l] = merge_features(
                output_dic['stage%d' % l], num_pieces, batch_size)

    if level is not None:
        # GAP(merge_features(stage6)) == mean over pieces of per-piece GAP
        # (pieces have equal area), so reuse 'logits' instead of a second GAP
        # pass that would re-read the merged stage6 from HBM.
        if output_dic['logits'].shape[0] != batch_size:
            npl = int(math.sqrt(num_pieces))
            output_dic['merged_logits'] = jnp.mean(
                output_dic['logits'].reshape(npl * npl, batch_size, NUM_CLASSES),
                axis=0)
        else:
            output_dic['merged_logits'] = output_dic['logits']
    return output_dic


# ---------------------------------- main -------------------------------------

if __name__ == "__main__":
    key = jax.random.PRNGKey(0)
    key, kx = jax.random.split(key)
    params = init_params(key)

    x = jax.random.normal(kx, (2, IN_CHANNELS, 32, 32), jnp.float32)  # NCHW

    fwd = jax.jit(classifier_for_puzzle_forward,
                  static_argnames=("num_pieces", "level"))
    out = fwd(params, x, num_pieces=4, level=1)
    jax.block_until_ready(out)

    # shape sanity checks (semantics of the PyTorch forward)
    assert out['logits'].shape == (2 * 4, NUM_CLASSES)           # pre-merge GAP
    assert out['merged_logits'].shape == (2, NUM_CLASSES)        # post-merge GAP
    assert out['stage6'].shape == (2, NUM_CLASSES, 2, 2)         # merged CAMs
    assert out['stage1'].shape == (2, STAGE_CHANNELS[0], 8, 8)
    assert out['stage5'].shape == (2, STAGE_CHANNELS[4], 2, 2)

    print("KERNEL_OK")
</pallas_src>

<mosaic_0001>
module attributes {stable_mosaic.version = 11 : i64} {
  func.func @kernel(%arg0: i32, %arg1: memref<16x128xbf16, #tpu.memory_space<vmem>>, %arg2: memref<128x128xbf16, #tpu.memory_space<vmem>>, %arg3: memref<128x128xbf16, #tpu.memory_space<vmem>>, %arg4: memref<128x128xbf16, #tpu.memory_space<vmem>>, %arg5: memref<128x128xbf16, #tpu.memory_space<vmem>>, %arg6: memref<128x128xbf16, #tpu.memory_space<vmem>>, %arg7: memref<128x128xbf16, #tpu.memory_space<vmem>>, %arg8: memref<1x128xf32, #tpu.memory_space<vmem>>, %arg9: memref<1x128xf32, #tpu.memory_space<vmem>>, %arg10: memref<1x128xf32, #tpu.memory_space<vmem>>, %arg11: memref<1x128xf32, #tpu.memory_space<vmem>>, %arg12: memref<1x128xf32, #tpu.memory_space<vmem>>, %arg13: memref<16x128xbf16, #tpu.memory_space<vmem>>, %arg14: memref<16x128xbf16, #tpu.memory_space<vmem>>, %arg15: memref<16x128xf32, #tpu.memory_space<vmem>>) attributes {dimension_semantics = [#tpu.dimension_semantics<parallel>], iteration_bounds = array<i64: 1>, scalar_prefetch = 0 : i64, scratch_operands = 0 : i64, tpu.core_type = #tpu.core_type<tc>, window_params = [{transform_indices = @transform_0, window_bounds = array<i64: 16, 128>}, {pipeline_mode = #tpu.pipeline_mode<synchronous>, transform_indices = @transform_1, window_bounds = array<i64: 128, 128>}, {pipeline_mode = #tpu.pipeline_mode<synchronous>, transform_indices = @transform_2, window_bounds = array<i64: 128, 128>}, {pipeline_mode = #tpu.pipeline_mode<synchronous>, transform_indices = @transform_3, window_bounds = array<i64: 128, 128>}, {pipeline_mode = #tpu.pipeline_mode<synchronous>, transform_indices = @transform_4, window_bounds = array<i64: 128, 128>}, {pipeline_mode = #tpu.pipeline_mode<synchronous>, transform_indices = @transform_5, window_bounds = array<i64: 128, 128>}, {pipeline_mode = #tpu.pipeline_mode<synchronous>, transform_indices = @transform_6, window_bounds = array<i64: 128, 128>}, {pipeline_mode = #tpu.pipeline_mode<synchronous>, transform_indices = @transform_7, window_bounds = array<i64: 1, 128>}, {pipeline_mode = #tpu.pipeline_mode<synchronous>, transform_indices = @transform_8, window_bounds = array<i64: 1, 128>}, {pipeline_mode = #tpu.pipeline_mode<synchronous>, transform_indices = @transform_9, window_bounds = array<i64: 1, 128>}, {pipeline_mode = #tpu.pipeline_mode<synchronous>, transform_indices = @transform_10, window_bounds = array<i64: 1, 128>}, {pipeline_mode = #tpu.pipeline_mode<synchronous>, transform_indices = @transform_11, window_bounds = array<i64: 1, 128>}, {transform_indices = @transform_12, window_bounds = array<i64: 16, 128>}, {transform_indices = @transform_13, window_bounds = array<i64: 16, 128>}, {transform_indices = @transform_14, window_bounds = array<i64: 16, 128>}]} {
    %c0 = arith.constant 0 : index
    %c0_0 = arith.constant 0 : index
    %0 = vector.load %arg1[%c0, %c0_0] : memref<16x128xbf16, #tpu.memory_space<vmem>>, vector<16x128xbf16>
    %c0_1 = arith.constant 0 : index
    %c0_2 = arith.constant 0 : index
    %1 = vector.load %arg2[%c0_1, %c0_2] : memref<128x128xbf16, #tpu.memory_space<vmem>>, vector<128x128xbf16>
    %cst = arith.constant dense<0.000000e+00> : vector<16x128xf32>
    %2 = tpu.matmul %0, %1, %cst {dimension_numbers = #tpu.dot_dimension_numbers<[1], [0], [0], [1], [0, 0, 1, 1], [], []>} : vector<16x128xbf16>, vector<128x128xbf16>, vector<16x128xf32> -> vector<16x128xf32>
    %c0_3 = arith.constant 0 : index
    %c0_4 = arith.constant 0 : index
    %3 = vector.load %arg8[%c0_3, %c0_4] : memref<1x128xf32, #tpu.memory_space<vmem>>, vector<1x128xf32>
    %4 = vector.broadcast %3 : vector<1x128xf32> to vector<16x128xf32>
    %5 = arith.addf %2, %4 : vector<16x128xf32>
    %cst_5 = arith.constant 0.000000e+00 : f32
    %6 = vector.broadcast %cst_5 : f32 to vector<16x128xf32>
    %7 = arith.maximumf %5, %6 : vector<16x128xf32>
    %8 = arith.truncf %7 : vector<16x128xf32> to vector<16x128xbf16>
    %c0_6 = arith.constant 0 : index
    %c0_7 = arith.constant 0 : index
    %9 = vector.load %arg3[%c0_6, %c0_7] : memref<128x128xbf16, #tpu.memory_space<vmem>>, vector<128x128xbf16>
    %cst_8 = arith.constant dense<0.000000e+00> : vector<16x128xf32>
    %10 = tpu.matmul %8, %9, %cst_8 {dimension_numbers = #tpu.dot_dimension_numbers<[1], [0], [0], [1], [0, 0, 1, 1], [], []>} : vector<16x128xbf16>, vector<128x128xbf16>, vector<16x128xf32> -> vector<16x128xf32>
    %c0_9 = arith.constant 0 : index
    %c0_10 = arith.constant 0 : index
    %11 = vector.load %arg9[%c0_9, %c0_10] : memref<1x128xf32, #tpu.memory_space<vmem>>, vector<1x128xf32>
    %12 = vector.broadcast %11 : vector<1x128xf32> to vector<16x128xf32>
    %13 = arith.addf %10, %12 : vector<16x128xf32>
    %cst_11 = arith.constant 0.000000e+00 : f32
    %14 = vector.broadcast %cst_11 : f32 to vector<16x128xf32>
    %15 = arith.maximumf %13, %14 : vector<16x128xf32>
    %16 = arith.truncf %15 : vector<16x128xf32> to vector<16x128xbf16>
    %c0_12 = arith.constant 0 : index
    %c0_13 = arith.constant 0 : index
    %17 = vector.load %arg4[%c0_12, %c0_13] : memref<128x128xbf16, #tpu.memory_space<vmem>>, vector<128x128xbf16>
    %cst_14 = arith.constant dense<0.000000e+00> : vector<16x128xf32>
    %18 = tpu.matmul %16, %17, %cst_14 {dimension_numbers = #tpu.dot_dimension_numbers<[1], [0], [0], [1], [0, 0, 1, 1], [], []>} : vector<16x128xbf16>, vector<128x128xbf16>, vector<16x128xf32> -> vector<16x128xf32>
    %c0_15 = arith.constant 0 : index
    %c0_16 = arith.constant 0 : index
    %19 = vector.load %arg10[%c0_15, %c0_16] : memref<1x128xf32, #tpu.memory_space<vmem>>, vector<1x128xf32>
    %20 = vector.broadcast %19 : vector<1x128xf32> to vector<16x128xf32>
    %21 = arith.addf %18, %20 : vector<16x128xf32>
    %cst_17 = arith.constant 0.000000e+00 : f32
    %22 = vector.broadcast %cst_17 : f32 to vector<16x128xf32>
    %23 = arith.maximumf %21, %22 : vector<16x128xf32>
    %24 = arith.truncf %23 : vector<16x128xf32> to vector<16x128xbf16>
    %c0_18 = arith.constant 0 : index
    %c0_19 = arith.constant 0 : index
    %25 = vector.load %arg5[%c0_18, %c0_19] : memref<128x128xbf16, #tpu.memory_space<vmem>>, vector<128x128xbf16>
    %cst_20 = arith.constant dense<0.000000e+00> : vector<16x128xf32>
    %26 = tpu.matmul %24, %25, %cst_20 {dimension_numbers = #tpu.dot_dimension_numbers<[1], [0], [0], [1], [0, 0, 1, 1], [], []>} : vector<16x128xbf16>, vector<128x128xbf16>, vector<16x128xf32> -> vector<16x128xf32>
    %c0_21 = arith.constant 0 : index
    %c0_22 = arith.constant 0 : index
    %27 = vector.load %arg11[%c0_21, %c0_22] : memref<1x128xf32, #tpu.memory_space<vmem>>, vector<1x128xf32>
    %28 = vector.broadcast %27 : vector<1x128xf32> to vector<16x128xf32>
    %29 = arith.addf %26, %28 : vector<16x128xf32>
    %cst_23 = arith.constant 0.000000e+00 : f32
    %30 = vector.broadcast %cst_23 : f32 to vector<16x128xf32>
    %31 = arith.maximumf %29, %30 : vector<16x128xf32>
    %32 = arith.truncf %31 : vector<16x128xf32> to vector<16x128xbf16>
    %c0_24 = arith.constant 0 : index
    %c0_25 = arith.constant 0 : index
    %33 = vector.load %arg13[%c0_24, %c0_25] : memref<16x128xbf16, #tpu.memory_space<vmem>>, vector<16x128xbf16>
    tpu.vector_store %arg13[%c0_24, %c0_25], %32 {strides = array<i32>} : memref<16x128xbf16, #tpu.memory_space<vmem>>, vector<16x128xbf16>,
    %c0_26 = arith.constant 0 : index
    %c0_27 = arith.constant 0 : index
    %34 = vector.load %arg6[%c0_26, %c0_27] : memref<128x128xbf16, #tpu.memory_space<vmem>>, vector<128x128xbf16>
    %cst_28 = arith.constant dense<0.000000e+00> : vector<16x128xf32>
    %35 = tpu.matmul %32, %34, %cst_28 {dimension_numbers = #tpu.dot_dimension_numbers<[1], [0], [0], [1], [0, 0, 1, 1], [], []>} : vector<16x128xbf16>, vector<128x128xbf16>, vector<16x128xf32> -> vector<16x128xf32>
    %c0_29 = arith.constant 0 : index
    %c0_30 = arith.constant 0 : index
    %36 = vector.load %arg12[%c0_29, %c0_30] : memref<1x128xf32, #tpu.memory_space<vmem>>, vector<1x128xf32>
    %37 = vector.broadcast %36 : vector<1x128xf32> to vector<16x128xf32>
    %38 = arith.addf %35, %37 : vector<16x128xf32>
    %cst_31 = arith.constant 0.000000e+00 : f32
    %39 = vector.broadcast %cst_31 : f32 to vector<16x128xf32>
    %40 = arith.maximumf %38, %39 : vector<16x128xf32>
    %41 = arith.truncf %40 : vector<16x128xf32> to vector<16x128xbf16>
    %c0_32 = arith.constant 0 : index
    %c0_33 = arith.constant 0 : index
    %42 = vector.load %arg14[%c0_32, %c0_33] : memref<16x128xbf16, #tpu.memory_space<vmem>>, vector<16x128xbf16>
    tpu.vector_store %arg14[%c0_32, %c0_33], %41 {strides = array<i32>} : memref<16x128xbf16, #tpu.memory_space<vmem>>, vector<16x128xbf16>,
    %c0_34 = arith.constant 0 : index
    %c0_35 = arith.constant 0 : index
    %43 = vector.load %arg7[%c0_34, %c0_35] : memref<128x128xbf16, #tpu.memory_space<vmem>>, vector<128x128xbf16>
    %cst_36 = arith.constant dense<0.000000e+00> : vector<16x128xf32>
    %44 = tpu.matmul %41, %43, %cst_36 {dimension_numbers = #tpu.dot_dimension_numbers<[1], [0], [0], [1], [0, 0, 1, 1], [], []>} : vector<16x128xbf16>, vector<128x128xbf16>, vector<16x128xf32> -> vector<16x128xf32>
    %c0_37 = arith.constant 0 : index
    %c0_38 = arith.constant 0 : index
    %45 = vector.load %arg15[%c0_37, %c0_38] : memref<16x128xf32, #tpu.memory_space<vmem>>, vector<16x128xf32>
    tpu.vector_store %arg15[%c0_37, %c0_38], %44 {strides = array<i32>} : memref<16x128xf32, #tpu.memory_space<vmem>>, vector<16x128xf32>,
    return
  }
  func.func @transform_0(%arg0: i32) -> (i32, i32) {
    %c0_i32 = arith.constant 0 : i32
    %c0_i32_0 = arith.constant 0 : i32
    return %arg0, %c0_i32 : i32, i32
  }
  func.func @transform_1(%arg0: i32) -> (i32, i32) {
    %c0_i32 = arith.constant 0 : i32
    %c0_i32_0 = arith.constant 0 : i32
    %c0_i32_1 = arith.constant 0 : i32
    return %c0_i32, %c0_i32_0 : i32, i32
  }
  func.func @transform_2(%arg0: i32) -> (i32, i32) {
    %c0_i32 = arith.constant 0 : i32
    %c0_i32_0 = arith.constant 0 : i32
    %c0_i32_1 = arith.constant 0 : i32
    return %c0_i32, %c0_i32_0 : i32, i32
  }
  func.func @transform_3(%arg0: i32) -> (i32, i32) {
    %c0_i32 = arith.constant 0 : i32
    %c0_i32_0 = arith.constant 0 : i32
    %c0_i32_1 = arith.constant 0 : i32
    return %c0_i32, %c0_i32_0 : i32, i32
  }
  func.func @transform_4(%arg0: i32) -> (i32, i32) {
    %c0_i32 = arith.constant 0 : i32
    %c0_i32_0 = arith.constant 0 : i32
    %c0_i32_1 = arith.constant 0 : i32
    return %c0_i32, %c0_i32_0 : i32, i32
  }
  func.func @transform_5(%arg0: i32) -> (i32, i32) {
    %c0_i32 = arith.constant 0 : i32
    %c0_i32_0 = arith.constant 0 : i32
    %c0_i32_1 = arith.constant 0 : i32
    return %c0_i32, %c0_i32_0 : i32, i32
  }
  func.func @transform_6(%arg0: i32) -> (i32, i32) {
    %c0_i32 = arith.constant 0 : i32
    %c0_i32_0 = arith.constant 0 : i32
    %c0_i32_1 = arith.constant 0 : i32
    return %c0_i32, %c0_i32_0 : i32, i32
  }
  func.func @transform_7(%arg0: i32) -> (i32, i32) {
    %c0_i32 = arith.constant 0 : i32
    %c0_i32_0 = arith.constant 0 : i32
    %c0_i32_1 = arith.constant 0 : i32
    return %c0_i32, %c0_i32_0 : i32, i32
  }
  func.func @transform_8(%arg0: i32) -> (i32, i32) {
    %c0_i32 = arith.constant 0 : i32
    %c0_i32_0 = arith.constant 0 : i32
    %c0_i32_1 = arith.constant 0 : i32
    return %c0_i32, %c0_i32_0 : i32, i32
  }
  func.func @transform_9(%arg0: i32) -> (i32, i32) {
    %c0_i32 = arith.constant 0 : i32
    %c0_i32_0 = arith.constant 0 : i32
    %c0_i32_1 = arith.constant 0 : i32
    return %c0_i32, %c0_i32_0 : i32, i32
  }
  func.func @transform_10(%arg0: i32) -> (i32, i32) {
    %c0_i32 = arith.constant 0 : i32
    %c0_i32_0 = arith.constant 0 : i32
    %c0_i32_1 = arith.constant 0 : i32
    return %c0_i32, %c0_i32_0 : i32, i32
  }
  func.func @transform_11(%arg0: i32) -> (i32, i32) {
    %c0_i32 = arith.constant 0 : i32
    %c0_i32_0 = arith.constant 0 : i32
    %c0_i32_1 = arith.constant 0 : i32
    return %c0_i32, %c0_i32_0 : i32, i32
  }
  func.func @transform_12(%arg0: i32) -> (i32, i32) {
    %c0_i32 = arith.constant 0 : i32
    %c0_i32_0 = arith.constant 0 : i32
    return %arg0, %c0_i32 : i32, i32
  }
  func.func @transform_13(%arg0: i32) -> (i32, i32) {
    %c0_i32 = arith.constant 0 : i32
    %c0_i32_0 = arith.constant 0 : i32
    return %arg0, %c0_i32 : i32, i32
  }
  func.func @transform_14(%arg0: i32) -> (i32, i32) {
    %c0_i32 = arith.constant 0 : i32
    %c0_i32_0 = arith.constant 0 : i32
    return %arg0, %c0_i32 : i32, i32
  }
}

module attributes {stable_mosaic.version = 11 : i64} {
  func.func @_gap_kernel(%arg0: i32, %arg1: i32, %arg2: memref<8x8x128xf32, #tpu.memory_space<vmem>>, %arg3: memref<8x128xf32, #tpu.memory_space<vmem>>, %arg4: memref<8x128xf32, #tpu.memory_space<vmem>>) attributes {dimension_semantics = [#tpu.dimension_semantics<parallel>, #tpu.dimension_semantics<arbitrary>], iteration_bounds = array<i64: 1, 1>, scalar_prefetch = 0 : i64, scratch_operands = 1 : i64, tpu.core_type = #tpu.core_type<tc>, window_params = [{transform_indices = @transform_0, window_bounds = array<i64: 8, 8, 128>}, {transform_indices = @transform_1, window_bounds = array<i64: 8, 128>}]} {
    %c0_i32 = arith.constant 0 : i32
    %0 = arith.cmpi eq, %arg1, %c0_i32 : i32
    %1 = arith.extui %0 : i1 to i32
    %c0_i32_0 = arith.constant 0 : i32
    %2 = arith.cmpi ne, %1, %c0_i32_0 : i32
    scf.if %2 {
      %cst_9 = arith.constant 0.000000e+00 : f32
      %11 = vector.broadcast %cst_9 : f32 to vector<8x128xf32>
      %c0_10 = arith.constant 0 : index
      %c0_11 = arith.constant 0 : index
      %12 = vector.load %arg4[%c0_10, %c0_11] : memref<8x128xf32, #tpu.memory_space<vmem>>, vector<8x128xf32>
      tpu.vector_store %arg4[%c0_10, %c0_11], %11 {strides = array<i32>} : memref<8x128xf32, #tpu.memory_space<vmem>>, vector<8x128xf32>,
    } else {
    }
    %c0 = arith.constant 0 : index
    %c0_1 = arith.constant 0 : index
    %3 = vector.load %arg4[%c0, %c0_1] : memref<8x128xf32, #tpu.memory_space<vmem>>, vector<8x128xf32>
    %c0_2 = arith.constant 0 : index
    %c0_3 = arith.constant 0 : index
    %c0_4 = arith.constant 0 : index
    %4 = vector.load %arg2[%c0_2, %c0_3, %c0_4] : memref<8x8x128xf32, #tpu.memory_space<vmem>>, vector<8x8x128xf32>
    %cst = arith.constant dense<0.000000e+00> : vector<8x128xf32>
    %5 = vector.multi_reduction <add>, %4, %cst [1] : vector<8x8x128xf32> to vector<8x128xf32>
    %6 = arith.addf %3, %5 : vector<8x128xf32>
    %c0_5 = arith.constant 0 : index
    %c0_6 = arith.constant 0 : index
    %7 = vector.load %arg4[%c0_5, %c0_6] : memref<8x128xf32, #tpu.memory_space<vmem>>, vector<8x128xf32>
    tpu.vector_store %arg4[%c0_5, %c0_6], %6 {strides = array<i32>} : memref<8x128xf32, #tpu.memory_space<vmem>>, vector<8x128xf32>,
    %c0_i32_7 = arith.constant 0 : i32
    %8 = arith.cmpi eq, %arg1, %c0_i32_7 : i32
    %9 = arith.extui %8 : i1 to i32
    %c0_i32_8 = arith.constant 0 : i32
    %10 = arith.cmpi ne, %9, %c0_i32_8 : i32
    scf.if %10 {
      %c0_9 = arith.constant 0 : index
      %c0_10 = arith.constant 0 : index
      %11 = vector.load %arg4[%c0_9, %c0_10] : memref<8x128xf32, #tpu.memory_space<vmem>>, vector<8x128xf32>
      %cst_11 = arith.constant 1.000000e+00 : f32
      %12 = vector.broadcast %cst_11 : f32 to vector<8x128xf32>
      %13 = arith.mulf %11, %12 : vector<8x128xf32>
      %c0_12 = arith.constant 0 : index
      %c0_13 = arith.constant 0 : index
      %14 = vector.load %arg3[%c0_12, %c0_13] : memref<8x128xf32, #tpu.memory_space<vmem>>, vector<8x128xf32>
      tpu.vector_store %arg3[%c0_12, %c0_13], %13 {strides = array<i32>} : memref<8x128xf32, #tpu.memory_space<vmem>>, vector<8x128xf32>,
    } else {
    }
    return
  }
  func.func @transform_0(%arg0: i32, %arg1: i32) -> (i32, i32, i32) {
    %c0_i32 = arith.constant 0 : i32
    %c0_i32_0 = arith.constant 0 : i32
    return %arg0, %arg1, %c0_i32 : i32, i32, i32
  }
  func.func @transform_1(%arg0: i32, %arg1: i32) -> (i32, i32) {
    %c0_i32 = arith.constant 0 : i32
    %c0_i32_0 = arith.constant 0 : i32
    return %arg0, %c0_i32 : i32, i32
  }
}

module attributes {stable_mosaic.version = 11 : i64} {
  func.func @kernel(%arg0: i32, %arg1: memref<16x128xbf16, #tpu.memory_space<vmem>>, %arg2: memref<128x128xbf16, #tpu.memory_space<vmem>>, %arg3: memref<128x128xbf16, #tpu.memory_space<vmem>>, %arg4: memref<128x128xbf16, #tpu.memory_space<vmem>>, %arg5: memref<1x128xf32, #tpu.memory_space<vmem>>, %arg6: memref<1x128xf32, #tpu.memory_space<vmem>>, %arg7: memref<1x128xf32, #tpu.memory_space<vmem>>, %arg8: memref<16x128xbf16, #tpu.memory_space<vmem>>) attributes {dimension_semantics = [#tpu.dimension_semantics<parallel>], iteration_bounds = array<i64: 2>, scalar_prefetch = 0 : i64, scratch_operands = 0 : i64, tpu.core_type = #tpu.core_type<tc>, window_params = [{transform_indices = @transform_0, window_bounds = array<i64: 16, 128>}, {pipeline_mode = #tpu.pipeline_mode<synchronous>, transform_indices = @transform_1, window_bounds = array<i64: 128, 128>}, {pipeline_mode = #tpu.pipeline_mode<synchronous>, transform_indices = @transform_2, window_bounds = array<i64: 128, 128>}, {pipeline_mode = #tpu.pipeline_mode<synchronous>, transform_indices = @transform_3, window_bounds = array<i64: 128, 128>}, {pipeline_mode = #tpu.pipeline_mode<synchronous>, transform_indices = @transform_4, window_bounds = array<i64: 1, 128>}, {pipeline_mode = #tpu.pipeline_mode<synchronous>, transform_indices = @transform_5, window_bounds = array<i64: 1, 128>}, {pipeline_mode = #tpu.pipeline_mode<synchronous>, transform_indices = @transform_6, window_bounds = array<i64: 1, 128>}, {transform_indices = @transform_7, window_bounds = array<i64: 16, 128>}]} {
    %c0 = arith.constant 0 : index
    %c0_0 = arith.constant 0 : index
    %0 = vector.load %arg1[%c0, %c0_0] : memref<16x128xbf16, #tpu.memory_space<vmem>>, vector<16x128xbf16>
    %c0_1 = arith.constant 0 : index
    %c0_2 = arith.constant 0 : index
    %1 = vector.load %arg2[%c0_1, %c0_2] : memref<128x128xbf16, #tpu.memory_space<vmem>>, vector<128x128xbf16>
    %cst = arith.constant dense<0.000000e+00> : vector<16x128xf32>
    %2 = tpu.matmul %0, %1, %cst {dimension_numbers = #tpu.dot_dimension_numbers<[1], [0], [0], [1], [0, 0, 1, 1], [], []>} : vector<16x128xbf16>, vector<128x128xbf16>, vector<16x128xf32> -> vector<16x128xf32>
    %c0_3 = arith.constant 0 : index
    %c0_4 = arith.constant 0 : index
    %3 = vector.load %arg5[%c0_3, %c0_4] : memref<1x128xf32, #tpu.memory_space<vmem>>, vector<1x128xf32>
    %4 = vector.broadcast %3 : vector<1x128xf32> to vector<16x128xf32>
    %5 = arith.addf %2, %4 : vector<16x128xf32>
    %cst_5 = arith.constant 0.000000e+00 : f32
    %6 = vector.broadcast %cst_5 : f32 to vector<16x128xf32>
    %7 = arith.maximumf %5, %6 : vector<16x128xf32>
    %8 = arith.truncf %7 : vector<16x128xf32> to vector<16x128xbf16>
    %c0_6 = arith.constant 0 : index
    %c0_7 = arith.constant 0 : index
    %9 = vector.load %arg3[%c0_6, %c0_7] : memref<128x128xbf16, #tpu.memory_space<vmem>>, vector<128x128xbf16>
    %cst_8 = arith.constant dense<0.000000e+00> : vector<16x128xf32>
    %10 = tpu.matmul %8, %9, %cst_8 {dimension_numbers = #tpu.dot_dimension_numbers<[1], [0], [0], [1], [0, 0, 1, 1], [], []>} : vector<16x128xbf16>, vector<128x128xbf16>, vector<16x128xf32> -> vector<16x128xf32>
    %c0_9 = arith.constant 0 : index
    %c0_10 = arith.constant 0 : index
    %11 = vector.load %arg6[%c0_9, %c0_10] : memref<1x128xf32, #tpu.memory_space<vmem>>, vector<1x128xf32>
    %12 = vector.broadcast %11 : vector<1x128xf32> to vector<16x128xf32>
    %13 = arith.addf %10, %12 : vector<16x128xf32>
    %cst_11 = arith.constant 0.000000e+00 : f32
    %14 = vector.broadcast %cst_11 : f32 to vector<16x128xf32>
    %15 = arith.maximumf %13, %14 : vector<16x128xf32>
    %16 = arith.truncf %15 : vector<16x128xf32> to vector<16x128xbf16>
    %c0_12 = arith.constant 0 : index
    %c0_13 = arith.constant 0 : index
    %17 = vector.load %arg4[%c0_12, %c0_13] : memref<128x128xbf16, #tpu.memory_space<vmem>>, vector<128x128xbf16>
    %cst_14 = arith.constant dense<0.000000e+00> : vector<16x128xf32>
    %18 = tpu.matmul %16, %17, %cst_14 {dimension_numbers = #tpu.dot_dimension_numbers<[1], [0], [0], [1], [0, 0, 1, 1], [], []>} : vector<16x128xbf16>, vector<128x128xbf16>, vector<16x128xf32> -> vector<16x128xf32>
    %c0_15 = arith.constant 0 : index
    %c0_16 = arith.constant 0 : index
    %19 = vector.load %arg7[%c0_15, %c0_16] : memref<1x128xf32, #tpu.memory_space<vmem>>, vector<1x128xf32>
    %20 = vector.broadcast %19 : vector<1x128xf32> to vector<16x128xf32>
    %21 = arith.addf %18, %20 : vector<16x128xf32>
    %cst_17 = arith.constant 0.000000e+00 : f32
    %22 = vector.broadcast %cst_17 : f32 to vector<16x128xf32>
    %23 = arith.maximumf %21, %22 : vector<16x128xf32>
    %24 = arith.truncf %23 : vector<16x128xf32> to vector<16x128xbf16>
    %c0_18 = arith.constant 0 : index
    %c0_19 = arith.constant 0 : index
    %25 = vector.load %arg8[%c0_18, %c0_19] : memref<16x128xbf16, #tpu.memory_space<vmem>>, vector<16x128xbf16>
    tpu.vector_store %arg8[%c0_18, %c0_19], %24 {strides = array<i32>} : memref<16x128xbf16, #tpu.memory_space<vmem>>, vector<16x128xbf16>,
    return
  }
  func.func @transform_0(%arg0: i32) -> (i32, i32) {
    %c0_i32 = arith.constant 0 : i32
    %c0_i32_0 = arith.constant 0 : i32
    return %arg0, %c0_i32 : i32, i32
  }
  func.func @transform_1(%arg0: i32) -> (i32, i32) {
    %c0_i32 = arith.constant 0 : i32
    %c0_i32_0 = arith.constant 0 : i32
    %c0_i32_1 = arith.constant 0 : i32
    return %c0_i32, %c0_i32_0 : i32, i32
  }
  func.func @transform_2(%arg0: i32) -> (i32, i32) {
    %c0_i32 = arith.constant 0 : i32
    %c0_i32_0 = arith.constant 0 : i32
    %c0_i32_1 = arith.constant 0 : i32
    return %c0_i32, %c0_i32_0 : i32, i32
  }
  func.func @transform_3(%arg0: i32) -> (i32, i32) {
    %c0_i32 = arith.constant 0 : i32
    %c0_i32_0 = arith.constant 0 : i32
    %c0_i32_1 = arith.constant 0 : i32
    return %c0_i32, %c0_i32_0 : i32, i32
  }
  func.func @transform_4(%arg0: i32) -> (i32, i32) {
    %c0_i32 = arith.constant 0 : i32
    %c0_i32_0 = arith.constant 0 : i32
    %c0_i32_1 = arith.constant 0 : i32
    return %c0_i32, %c0_i32_0 : i32, i32
  }
  func.func @transform_5(%arg0: i32) -> (i32, i32) {
    %c0_i32 = arith.constant 0 : i32
    %c0_i32_0 = arith.constant 0 : i32
    %c0_i32_1 = arith.constant 0 : i32
    return %c0_i32, %c0_i32_0 : i32, i32
  }
  func.func @transform_6(%arg0: i32) -> (i32, i32) {
    %c0_i32 = arith.constant 0 : i32
    %c0_i32_0 = arith.constant 0 : i32
    %c0_i32_1 = arith.constant 0 : i32
    return %c0_i32, %c0_i32_0 : i32, i32
  }
  func.func @transform_7(%arg0: i32) -> (i32, i32) {
    %c0_i32 = arith.constant 0 : i32
    %c0_i32_0 = arith.constant 0 : i32
    return %arg0, %c0_i32 : i32, i32
  }
}

module attributes {stable_mosaic.version = 11 : i64} {
  func.func @kernel(%arg0: i32, %arg1: memref<64x128xbf16, #tpu.memory_space<vmem>>, %arg2: memref<128x128xbf16, #tpu.memory_space<vmem>>, %arg3: memref<128x128xbf16, #tpu.memory_space<vmem>>, %arg4: memref<1x128xf32, #tpu.memory_space<vmem>>, %arg5: memref<1x128xf32, #tpu.memory_space<vmem>>, %arg6: memref<64x128xbf16, #tpu.memory_space<vmem>>, %arg7: memref<64x128xbf16, #tpu.memory_space<vmem>>) attributes {dimension_semantics = [#tpu.dimension_semantics<parallel>], iteration_bounds = array<i64: 2>, scalar_prefetch = 0 : i64, scratch_operands = 0 : i64, tpu.core_type = #tpu.core_type<tc>, window_params = [{transform_indices = @transform_0, window_bounds = array<i64: 64, 128>}, {pipeline_mode = #tpu.pipeline_mode<synchronous>, transform_indices = @transform_1, window_bounds = array<i64: 128, 128>}, {pipeline_mode = #tpu.pipeline_mode<synchronous>, transform_indices = @transform_2, window_bounds = array<i64: 128, 128>}, {pipeline_mode = #tpu.pipeline_mode<synchronous>, transform_indices = @transform_3, window_bounds = array<i64: 1, 128>}, {pipeline_mode = #tpu.pipeline_mode<synchronous>, transform_indices = @transform_4, window_bounds = array<i64: 1, 128>}, {transform_indices = @transform_5, window_bounds = array<i64: 64, 128>}, {transform_indices = @transform_6, window_bounds = array<i64: 64, 128>}]} {
    %c0 = arith.constant 0 : index
    %c0_0 = arith.constant 0 : index
    %0 = vector.load %arg1[%c0, %c0_0] : memref<64x128xbf16, #tpu.memory_space<vmem>>, vector<64x128xbf16>
    %c0_1 = arith.constant 0 : index
    %c0_2 = arith.constant 0 : index
    %1 = vector.load %arg2[%c0_1, %c0_2] : memref<128x128xbf16, #tpu.memory_space<vmem>>, vector<128x128xbf16>
    %cst = arith.constant dense<0.000000e+00> : vector<64x128xf32>
    %2 = tpu.matmul %0, %1, %cst {dimension_numbers = #tpu.dot_dimension_numbers<[1], [0], [0], [1], [0, 0, 1, 1], [], []>} : vector<64x128xbf16>, vector<128x128xbf16>, vector<64x128xf32> -> vector<64x128xf32>
    %c0_3 = arith.constant 0 : index
    %c0_4 = arith.constant 0 : index
    %3 = vector.load %arg4[%c0_3, %c0_4] : memref<1x128xf32, #tpu.memory_space<vmem>>, vector<1x128xf32>
    %4 = vector.broadcast %3 : vector<1x128xf32> to vector<64x128xf32>
    %5 = arith.addf %2, %4 : vector<64x128xf32>
    %cst_5 = arith.constant 0.000000e+00 : f32
    %6 = vector.broadcast %cst_5 : f32 to vector<64x128xf32>
    %7 = arith.maximumf %5, %6 : vector<64x128xf32>
    %8 = arith.truncf %7 : vector<64x128xf32> to vector<64x128xbf16>
    %c0_6 = arith.constant 0 : index
    %c0_7 = arith.constant 0 : index
    %9 = vector.load %arg6[%c0_6, %c0_7] : memref<64x128xbf16, #tpu.memory_space<vmem>>, vector<64x128xbf16>
    tpu.vector_store %arg6[%c0_6, %c0_7], %8 {strides = array<i32>} : memref<64x128xbf16, #tpu.memory_space<vmem>>, vector<64x128xbf16>,
    %c0_8 = arith.constant 0 : index
    %c0_9 = arith.constant 0 : index
    %10 = vector.load %arg3[%c0_8, %c0_9] : memref<128x128xbf16, #tpu.memory_space<vmem>>, vector<128x128xbf16>
    %cst_10 = arith.constant dense<0.000000e+00> : vector<64x128xf32>
    %11 = tpu.matmul %8, %10, %cst_10 {dimension_numbers = #tpu.dot_dimension_numbers<[1], [0], [0], [1], [0, 0, 1, 1], [], []>} : vector<64x128xbf16>, vector<128x128xbf16>, vector<64x128xf32> -> vector<64x128xf32>
    %c0_11 = arith.constant 0 : index
    %c0_12 = arith.constant 0 : index
    %12 = vector.load %arg5[%c0_11, %c0_12] : memref<1x128xf32, #tpu.memory_space<vmem>>, vector<1x128xf32>
    %13 = vector.broadcast %12 : vector<1x128xf32> to vector<64x128xf32>
    %14 = arith.addf %11, %13 : vector<64x128xf32>
    %cst_13 = arith.constant 0.000000e+00 : f32
    %15 = vector.broadcast %cst_13 : f32 to vector<64x128xf32>
    %16 = arith.maximumf %14, %15 : vector<64x128xf32>
    %17 = arith.truncf %16 : vector<64x128xf32> to vector<64x128xbf16>
    %c0_14 = arith.constant 0 : index
    %c0_15 = arith.constant 0 : index
    %18 = vector.load %arg7[%c0_14, %c0_15] : memref<64x128xbf16, #tpu.memory_space<vmem>>, vector<64x128xbf16>
    tpu.vector_store %arg7[%c0_14, %c0_15], %17 {strides = array<i32>} : memref<64x128xbf16, #tpu.memory_space<vmem>>, vector<64x128xbf16>,
    return
  }
  func.func @transform_0(%arg0: i32) -> (i32, i32) {
    %c0_i32 = arith.constant 0 : i32
    %c0_i32_0 = arith.constant 0 : i32
    return %arg0, %c0_i32 : i32, i32
  }
  func.func @transform_1(%arg0: i32) -> (i32, i32) {
    %c0_i32 = arith.constant 0 : i32
    %c0_i32_0 = arith.constant 0 : i32
    %c0_i32_1 = arith.constant 0 : i32
    return %c0_i32, %c0_i32_0 : i32, i32
  }
  func.func @transform_2(%arg0: i32) -> (i32, i32) {
    %c0_i32 = arith.constant 0 : i32
    %c0_i32_0 = arith.constant 0 : i32
    %c0_i32_1 = arith.constant 0 : i32
    return %c0_i32, %c0_i32_0 : i32, i32
  }
  func.func @transform_3(%arg0: i32) -> (i32, i32) {
    %c0_i32 = arith.constant 0 : i32
    %c0_i32_0 = arith.constant 0 : i32
    %c0_i32_1 = arith.constant 0 : i32
    return %c0_i32, %c0_i32_0 : i32, i32
  }
  func.func @transform_4(%arg0: i32) -> (i32, i32) {
    %c0_i32 = arith.constant 0 : i32
    %c0_i32_0 = arith.constant 0 : i32
    %c0_i32_1 = arith.constant 0 : i32
    return %c0_i32, %c0_i32_0 : i32, i32
  }
  func.func @transform_5(%arg0: i32) -> (i32, i32) {
    %c0_i32 = arith.constant 0 : i32
    %c0_i32_0 = arith.constant 0 : i32
    return %arg0, %c0_i32 : i32, i32
  }
  func.func @transform_6(%arg0: i32) -> (i32, i32) {
    %c0_i32 = arith.constant 0 : i32
    %c0_i32_0 = arith.constant 0 : i32
    return %arg0, %c0_i32 : i32, i32
  }
}

</mosaic_0001>

<bundles_post_ra>
// kernel: classifier_for_puzzle_forward.7
= control target key start
LH: loop header
LB: loop body
LE: loop exit
PB: predicated region body
PF: predicated region fallthrough
CT: control target
= control target key end

     0   :  { %vm78_vm0 = vcmask 1041409   ;;  %vm80_vm1 = vcmask 1042434   ;;  %vm82_vm2 = vcmask 1043459   ;;  %vm84_vm3 = vcmask 1044484   ;;  %s143_s0 = inlined_call_operand.vmem [shape: f32[8,8,128], index: 0, kind: input, shape index: {}]   ;;  %s144_s1 = inlined_call_operand.vmem [shape: f32[8,128], index: 1, kind: output, shape index: {}]  }
   0x1   :  { %v14_v0 = vld [vmem:[%s143_s0] sm:$0xff]  ;;  %v15_v1 = vld [vmem:[%s143_s0 + $0x8] sm:$0xff]  ;;  %v16_v2 = vld [vmem:[%s143_s0 + $0x10] sm:$0xff]  ;;  %vm86_vm4 = vcmask 1045509   ;;  %vm88_vm5 = vcmask 1046534   ;;  %vm90_vm6 = vcmask 1047559  }
   0x2   :  { %v17_v3 = vld [vmem:[%s143_s0 + $0x18] sm:$0xff]  ;;  %v18_v4 = vld [vmem:[%s143_s0 + $0x20] sm:$0xff]  ;;  %v19_v5 = vld [vmem:[%s143_s0 + $0x28] sm:$0xff]  ;;  %v22_v6 = vrot.slane %v14_v0, 4  ;;  %v28_v7 = vrot.slane %v15_v1, 4  ;;  %v34_v8 = vrot.slane %v16_v2, 4 }
   0x3   :  { %v20_v9 = vld [vmem:[%s143_s0 + $0x30] sm:$0xff]  ;;  %v21_v10 = vld [vmem:[%s143_s0 + $0x38] sm:$0xff]  ;;  %v40_v11 = vrot.slane %v17_v3, 4  ;;  %v46_v12 = vrot.slane %v18_v4, 4  ;;  %v52_v13 = vrot.slane %v19_v5, 4 }
   0x4   :  { %v23_v14 = vadd.f32 %v22_v6, %v14_v0  ;;  %v29_v15 = vadd.f32 %v28_v7, %v15_v1  ;;  %v35_v16 = vadd.f32 %v34_v8, %v16_v2  ;;  %v58_v17 = vrot.slane %v20_v9, 4 }
   0x5   :  { %v41_v18 = vadd.f32 %v40_v11, %v17_v3  ;;  %v47_v19 = vadd.f32 %v46_v12, %v18_v4  ;;  %v53_v20 = vadd.f32 %v52_v13, %v19_v5  ;;  %v64_v21 = vrot.slane %v21_v10, 4 }
   0x6   :  { %v24_v22 = vrot.slane %v23_v14, 2  ;;  %v30_v23 = vrot.slane %v29_v15, 2  ;;  %v36_v24 = vrot.slane %v35_v16, 2  ;;  %v59_v25 = vadd.f32 %v58_v17, %v20_v9 }
   0x7   :  { %v42_v26 = vrot.slane %v41_v18, 2  ;;  %v48_v27 = vrot.slane %v47_v19, 2  ;;  %v54_v28 = vrot.slane %v53_v20, 2  ;;  %v65_v29 = vadd.f32 %v64_v21, %v21_v10 }
   0x8   :  { %v25_v30 = vadd.f32 %v24_v22, %v23_v14  ;;  %v31_v31 = vadd.f32 %v30_v23, %v29_v15  ;;  %v37_v32 = vadd.f32 %v36_v24, %v35_v16  ;;  %v60_v33 = vrot.slane %v59_v25, 2 }
   0x9   :  { %v43_v34 = vadd.f32 %v42_v26, %v41_v18  ;;  %v49_v35 = vadd.f32 %v48_v27, %v47_v19  ;;  %v55_v36 = vadd.f32 %v54_v28, %v53_v20  ;;  %v66_v37 = vrot.slane %v65_v29, 2 }
   0xa   :  { %v26_v38 = vrot.slane %v25_v30, 1  ;;  %v32_v39 = vrot.slane %v31_v31, 1  ;;  %v38_v40 = vrot.slane %v37_v32, 1  ;;  %v61_v41 = vadd.f32 %v60_v33, %v59_v25 }
   0xb   :  { %v44_v42 = vrot.slane %v43_v34, 1  ;;  %v50_v43 = vrot.slane %v49_v35, 1  ;;  %v56_v44 = vrot.slane %v55_v36, 1  ;;  %v67_v45 = vadd.f32 %v66_v37, %v65_v29 }
   0xc   :  { %v27_v46 = vadd.f32 %v26_v38, %v25_v30  ;;  %v33_v47 = vadd.f32 %v32_v39, %v31_v31  ;;  %v39_v48 = vadd.f32 %v38_v40, %v37_v32  ;;  %v62_v49 = vrot.slane %v61_v41, 1 }
   0xd   :  { %v45_v50 = vadd.f32 %v44_v42, %v43_v34  ;;  %v51_v51 = vadd.f32 %v50_v43, %v49_v35  ;;  %v68_v52 = vrot.slane %v67_v45, 1  ;;  %v57_v53 = vadd.f32 %v56_v44, %v55_v36 }
   0xe   :  { %v79_v54 = vsel %vm78_vm0, %v33_v47, %v27_v46  ;;  %v63_v55 = vadd.f32 %v62_v49, %v61_v41 }
   0xf   :  { %v81_v56 = vsel %vm80_vm1, %v39_v48, %v79_v54  ;;  %v69_v57 = vadd.f32 %v68_v52, %v67_v45 }
  0x10   :  { %v83_v58 = vsel %vm82_vm2, %v45_v50, %v81_v56 }
  0x11   :  { %v85_v59 = vsel %vm84_vm3, %v51_v51, %v83_v58 }
  0x12   :  { %v87_v60 = vsel %vm86_vm4, %v57_v53, %v85_v59 }
  0x13   :  { %v89_v61 = vsel %vm88_vm5, %v63_v55, %v87_v60 }
  0x14   :  { %v91_v62 = vsel %vm90_vm6, %v69_v57, %v89_v61 }
  0x15   :  { %99 = vst [vmem:[%s144_s1] sm:$0xff] %v91_v62 }

// kernel: classifier_for_puzzle_forward.6
= control target key start
LH: loop header
LB: loop body
LE: loop exit
PB: predicated region body
PF: predicated region fallthrough
CT: control target
= control target key end

     0   :  { %s1096_s1 = inlined_call_operand.vmem [shape: bf16[128,128], index: 1, kind: input, shape index: {}]   ;;  %s1097_s2 = inlined_call_operand.vmem [shape: bf16[128,128], index: 2, kind: input, shape index: {}]   ;;  %s1098_s7 = inlined_call_operand.vmem [shape: f32[1,128], index: 7, kind: input, shape index: {}]   ;;  %s1099_s0 = inlined_call_operand.vmem [shape: bf16[16,128], index: 0, kind: input, shape index: {}]   ;;  %s1100_s8 = inlined_call_operand.vmem [shape: f32[1,128], index: 8, kind: input, shape index: {}]   ;;  %s1101_s3 = inlined_call_operand.vmem [shape: bf16[128,128], index: 3, kind: input, shape index: {}]   ;;  %s1102_s9 = inlined_call_operand.vmem [shape: f32[1,128], index: 9, kind: input, shape index: {}]   ;;  %s1103_s4 = inlined_call_operand.vmem [shape: bf16[128,128], index: 4, kind: input, shape index: {}]   ;;  %s1104_s10 = inlined_call_operand.vmem [shape: f32[1,128], index: 10, kind: input, shape index: {}]   ;;  %s1105_s5 = inlined_call_operand.vmem [shape: bf16[128,128], index: 5, kind: input, shape index: {}]   ;;  %s1106_s11 = inlined_call_operand.vmem [shape: f32[1,128], index: 11, kind: input, shape index: {}]   ;;  %s1107_s6 = inlined_call_operand.vmem [shape: bf16[128,128], index: 6, kind: input, shape index: {}]   ;;  %s1108_s12 = inlined_call_operand.vmem [shape: bf16[16,128], index: 12, kind: output, shape index: {0}]   ;;  %s1109_s13 = inlined_call_operand.vmem [shape: bf16[16,128], index: 13, kind: output, shape index: {1}]   ;;  %s1110_s14 = inlined_call_operand.vmem [shape: f32[16,128], index: 14, kind: output, shape index: {2}]  }
   0x1   :  { %v791_v0 = vld [vmem:[%s1096_s1 + $0x38] sm:$0xff]  ;;  %v790_v1 = vld [vmem:[%s1096_s1 + $0x30] sm:$0xff]  ;;  %v789_v4 = vld [vmem:[%s1096_s1 + $0x28] sm:$0xff] }
   0x2   :  { %120 = vmatpush.bf16.msra.mxu0 %v791_v0  ;;  %v799_v2 = vld [vmem:[%s1097_s2 + $0x38] sm:$0xff]  ;;  %v798_v3 = vld [vmem:[%s1097_s2 + $0x30] sm:$0xff]  ;;  %v797_v5 = vld [vmem:[%s1097_s2 + $0x28] sm:$0xff] }
   0x3   :  { %205 = vmatpush.bf16.msra.mxu1 %v799_v2  ;;  %v788_v6 = vld [vmem:[%s1096_s1 + $0x20] sm:$0xff]  ;;  %v787_v8 = vld [vmem:[%s1096_s1 + $0x18] sm:$0xff]  ;;  %v786_v9 = vld [vmem:[%s1096_s1 + $0x10] sm:$0xff] }
   0x4   :  { %v796_v7 = vld [vmem:[%s1097_s2 + $0x20] sm:$0xff]  ;;  %v785_v10 = vld [vmem:[%s1096_s1 + $0x8] sm:$0xff]  ;;  %v795_v13 = vld [vmem:[%s1097_s2 + $0x18] sm:$0xff] }
   0x5   :  { %v784_v11 = vld [vmem:[%s1096_s1] sm:$0xff]  ;;  %v794_v14 = vld [vmem:[%s1097_s2 + $0x10] sm:$0xff]  ;;  %v793_v15 = vld [vmem:[%s1097_s2 + $0x8] sm:$0xff] }
   0x6   :  { %121 = vmatpush.bf16.msra.mxu0 %v790_v1  ;;  %v783_v12 = vld [vmem:[%s1099_s0] sm:$0xff]  ;;  %v807_v17 = vld [vmem:[%s1101_s3 + $0x38] sm:$0xff]  ;;  %v806_v18 = vld [vmem:[%s1101_s3 + $0x30] sm:$0xff] }
   0x7   :  { %206 = vmatpush.bf16.msra.mxu1 %v798_v3  ;;  %v792_v16 = vld [vmem:[%s1097_s2] sm:$0xff]  ;;  %290 = vmatpush.bf16.msra.mxu2 %v807_v17  ;;  %v805_v19 = vld [vmem:[%s1101_s3 + $0x28] sm:$0xff]  ;;  %v803_v29 = vld [vmem:[%s1101_s3 + $0x18] sm:$0xff] }
   0x8   :  { %v804_v20 = vld [vmem:[%s1101_s3 + $0x20] sm:$0xff]  ;;  %v802_v30 = vld [vmem:[%s1101_s3 + $0x10] sm:$0xff]  ;;  %v801_v31 = vld [vmem:[%s1101_s3 + $0x8] sm:$0xff] }
   0x9   :  { %v842_v22 = vld [vmem:[%s1098_s7] ss:$0 sm:$0xff]  ;;  %v815_v33 = vld [vmem:[%s1103_s4 + $0x38] sm:$0xff]  ;;  %v814_v34 = vld [vmem:[%s1103_s4 + $0x30] sm:$0xff] }
   0xa   :  { %122 = vmatpush.bf16.msra.mxu0 %v789_v4  ;;  %v800_v32 = vld [vmem:[%s1101_s3] sm:$0xff]  ;;  %375 = vmatpush.bf16.msra.mxu3 %v815_v33  ;;  %v813_v35 = vld [vmem:[%s1103_s4 + $0x28] sm:$0xff]  ;;  %v811_v45 = vld [vmem:[%s1103_s4 + $0x18] sm:$0xff] }
   0xb   :  { %207 = vmatpush.bf16.msra.mxu1 %v797_v5  ;;  %291 = vmatpush.bf16.msra.mxu2 %v806_v18  ;;  %v812_v36 = vld [vmem:[%s1103_s4 + $0x20] sm:$0xff]  ;;  %v810_v46 = vld [vmem:[%s1103_s4 + $0x10] sm:$0xff]  ;;  %v809_v47 = vld [vmem:[%s1103_s4 + $0x8] sm:$0xff] }
   0xc   :  { %v843_v38 = vld [vmem:[%s1100_s8] ss:$0 sm:$0xff]  ;;  %v823_v49 = vld [vmem:[%s1105_s5 + $0x38] sm:$0xff]  ;;  %v822_v50 = vld [vmem:[%s1105_s5 + $0x30] sm:$0xff] }
   0xd   :  { %v808_v48 = vld [vmem:[%s1103_s4] sm:$0xff]  ;;  %v821_v51 = vld [vmem:[%s1105_s5 + $0x28] sm:$0xff]  ;;  %v819_v61 = vld [vmem:[%s1105_s5 + $0x18] sm:$0xff] }
   0xe   :  { %123 = vmatpush.bf16.msra.mxu0 %v788_v6  ;;  %376 = vmatpush.bf16.msra.mxu3 %v814_v34  ;;  %v844_v53 = vld [vmem:[%s1102_s9] ss:$0 sm:$0xff]  ;;  %v818_v62 = vld [vmem:[%s1105_s5 + $0x10] sm:$0xff]  ;;  %v817_v63 = vld [vmem:[%s1105_s5 + $0x8] sm:$0xff] }
   0xf   :  { %208 = vmatpush.bf16.msra.mxu1 %v796_v7  ;;  %292 = vmatpush.bf16.msra.mxu2 %v805_v19  ;;  %v820_v60 = vld [vmem:[%s1105_s5 + $0x20] sm:$0xff]  ;;  %v831_v1 = vld [vmem:[%s1107_s6 + $0x38] sm:$0xff]  ;;  %v830_v2 = vld [vmem:[%s1107_s6 + $0x30] sm:$0xff] }
  0x10   :  { %v816_v0 = vld [vmem:[%s1105_s5] sm:$0xff]  ;;  %v829_v3 = vld [vmem:[%s1107_s6 + $0x28] sm:$0xff]  ;;  %v827_v18 = vld [vmem:[%s1107_s6 + $0x18] sm:$0xff] }
  0x11   :  { %v845_v4 = vld [vmem:[%s1104_s10] ss:$0 sm:$0xff]  ;;  %v826_v19 = vld [vmem:[%s1107_s6 + $0x10] sm:$0xff] }
  0x12   :  { %124 = vmatpush.bf16.msra.mxu0 %v787_v8  ;;  %377 = vmatpush.bf16.msra.mxu3 %v813_v35  ;;  %v828_v17 = vld [vmem:[%s1107_s6 + $0x20] sm:$0xff] }
  0x13   :  { %209 = vmatpush.bf16.msra.mxu1 %v795_v13  ;;  %293 = vmatpush.bf16.msra.mxu2 %v804_v20  ;;  %v825_v20 = vld [vmem:[%s1107_s6 + $0x8] sm:$0xff] }
  0x16   :  { %125 = vmatpush.bf16.msra.mxu0 %v786_v9  ;;  %378 = vmatpush.bf16.msra.mxu3 %v812_v36 }
  0x17   :  { %210 = vmatpush.bf16.msra.mxu1 %v794_v14  ;;  %294 = vmatpush.bf16.msra.mxu2 %v803_v29 }
  0x1a   :  { %126 = vmatpush.bf16.msra.mxu0 %v785_v10  ;;  %379 = vmatpush.bf16.msra.mxu3 %v811_v45 }
  0x1b   :  { %211 = vmatpush.bf16.msra.mxu1 %v793_v15  ;;  %295 = vmatpush.bf16.msra.mxu2 %v802_v30 }
  0x1e   :  { %127 = vmatpush.bf16.msra.mxu0 %v784_v11  ;;  %380 = vmatpush.bf16.msra.mxu3 %v810_v46 }
  0x1f   :  { %212 = vmatpush.bf16.msra.mxu1 %v792_v16  ;;  %296 = vmatpush.bf16.msra.mxu2 %v801_v31 }
  0x21   :  { %128 = vmatmul.bf16.vlgmr.msra.gmra.mxu0 %v783_v12 }
  0x22   :  { %381 = vmatpush.bf16.msra.mxu3 %v809_v47  ;;  %469 = vmatpush.bf16.msrb.mxu0 %v823_v49 }
  0x23   :  { %297 = vmatpush.bf16.msra.mxu2 %v800_v32  ;;  %559 = vmatpush.bf16.msrb.mxu1 %v831_v1 }
  0x26   :  { %382 = vmatpush.bf16.msra.mxu3 %v808_v48  ;;  %470 = vmatpush.bf16.msrb.mxu0 %v822_v50 }
  0x27   :  { %560 = vmatpush.bf16.msrb.mxu1 %v830_v2 }
  0x2a   :  { %471 = vmatpush.bf16.msrb.mxu0 %v821_v51 }
  0x2b   :  { %561 = vmatpush.bf16.msrb.mxu1 %v829_v3 }
  0x2e   :  { %472 = vmatpush.bf16.msrb.mxu0 %v820_v60 }
  0x2f   :  { %562 = vmatpush.bf16.msrb.mxu1 %v828_v17 }
  0x32   :  { %473 = vmatpush.bf16.msrb.mxu0 %v819_v61 }
  0x33   :  { %563 = vmatpush.bf16.msrb.mxu1 %v827_v18 }
  0x36   :  { %474 = vmatpush.bf16.msrb.mxu0 %v818_v62 }
  0x37   :  { %564 = vmatpush.bf16.msrb.mxu1 %v826_v19 }
  0x3a   :  { %475 = vmatpush.bf16.msrb.mxu0 %v817_v63 }
  0x3b   :  { %565 = vmatpush.bf16.msrb.mxu1 %v825_v20 }
  0x3e   :  { %476 = vmatpush.bf16.msrb.mxu0 %v816_v0 }
  0x9e   :  { %v129_v21 = vpop.f32.mrf.mxu0 }
  0x9f   :  { %v130_v23 = vadd.f32 %v842_v22, %v129_v21  ;;  %v824_v21 = vld [vmem:[%s1107_s6] sm:$0xff] }
  0xa0   :  { %566 = vmatpush.bf16.msrb.mxu1 %v824_v21 }
  0xa1   :  { %v134_v26 = vmax.f32 %v130_v23, 0.0 }
  0xa6   :  { %v131_v24 = vpop.f32.mrf.mxu0 }
  0xa7   :  { %v132_v25 = vadd.f32 %v842_v22, %v131_v24  ;;  %v846_v22 = vld [vmem:[%s1106_s11] ss:$0 sm:$0xff] }
  0xa9   :  { %v135_v27 = vmax.f32 %v132_v25, 0.0 }
  0xab   :  { %v136_v28 = vpack.c.bf16 %v135_v27, %v134_v26 }
  0xad   :  { %213 = vmatmul.bf16.vlgmr.msra.gmra.mxu1 %v136_v28 }
 0x12a   :  { %v214_v37 = vpop.f32.mrf.mxu1 }
 0x12b   :  { %v215_v39 = vadd.f32 %v843_v38, %v214_v37 }
 0x12d   :  { %v219_v42 = vmax.f32 %v215_v39, 0.0 }
 0x132   :  { %v216_v40 = vpop.f32.mrf.mxu1 }
 0x133   :  { %v217_v41 = vadd.f32 %v843_v38, %v216_v40 }
 0x135   :  { %v220_v43 = vmax.f32 %v217_v41, 0.0 }
 0x137   :  { %v221_v44 = vpack.c.bf16 %v220_v43, %v219_v42 }
 0x139   :  { %298 = vmatmul.bf16.vlgmr.msra.gmra.mxu2 %v221_v44 }
 0x1bc   :  { %v299_v52 = vpop.f32.mrf.mxu2 }
 0x1bd   :  { %v300_v54 = vadd.f32 %v844_v53, %v299_v52 }
 0x1bf   :  { %v304_v57 = vmax.f32 %v300_v54, 0.0 }
 0x1c4   :  { %v301_v55 = vpop.f32.mrf.mxu2 }
 0x1c5   :  { %v302_v56 = vadd.f32 %v844_v53, %v301_v55 }
 0x1c7   :  { %v305_v58 = vmax.f32 %v302_v56, 0.0 }
 0x1c9   :  { %v306_v59 = vpack.c.bf16 %v305_v58, %v304_v57 }
 0x1cb   :  { %383 = vmatmul.bf16.vlgmr.msra.gmra.mxu3 %v306_v59 }
 0x24e   :  { %v384_v5 = vpop.f32.mrf.mxu3 }
 0x24f   :  { %v385_v6 = vadd.f32 %v845_v4, %v384_v5 }
 0x251   :  { %v389_v7 = vmax.f32 %v385_v6, 0.0 }
 0x253   :  { %v391_v10 = vpack.c.bf16 %v389_v7, %v389_v7 }
 0x255   :  { %v417_v14 = vunpack.c.l.b16 %v391_v10 }
 0x256   :  { %v386_v8 = vpop.f32.mrf.mxu3 }
 0x257   :  { %v387_v9 = vadd.f32 %v845_v4, %v386_v8 }
 0x259   :  { %v390_v11 = vmax.f32 %v387_v9, 0.0 }
 0x25b   :  { %v392_v12 = vpack.c.bf16 %v390_v11, %v390_v11  ;;  %v835_v13 = vpack.c.bf16 %v390_v11, %v389_v7 }
 0x25d   :  { %836 = vst [vmem:[%s1108_s12] sm:$0xff] %v835_v13   ;;  %v418_v15 = vunpack.c.l.b16 %v392_v12 }
 0x25f   :  { %v419_v16 = vpack.c.b16 %v418_v15, %v417_v14 }
 0x261   :  { %477 = vmatmul.bf16.vlgmr.msrb.gmra.mxu0 %v419_v16 }
 0x2de   :  { %v478_v23 = vpop.f32.mrf.mxu0 }
 0x2df   :  { %v479_v24 = vadd.f32 %v846_v22, %v478_v23 }
 0x2e1   :  { %v483_v25 = vmax.f32 %v479_v24, 0.0 }
 0x2e3   :  { %v485_v28 = vpack.c.bf16 %v483_v25, %v483_v25 }
 0x2e5   :  { %v507_v32 = vunpack.c.l.b16 %v485_v28 }
 0x2e6   :  { %v480_v26 = vpop.f32.mrf.mxu0 }
 0x2e7   :  { %v481_v27 = vadd.f32 %v846_v22, %v480_v26 }
 0x2e9   :  { %v484_v29 = vmax.f32 %v481_v27, 0.0 }
 0x2eb   :  { %v486_v30 = vpack.c.bf16 %v484_v29, %v484_v29  ;;  %v840_v31 = vpack.c.bf16 %v484_v29, %v483_v25 }
 0x2ed   :  { %841 = vst [vmem:[%s1109_s13] sm:$0xff] %v840_v31   ;;  %v508_v33 = vunpack.c.l.b16 %v486_v30 }
 0x2ef   :  { %v509_v34 = vpack.c.b16 %v508_v33, %v507_v32 }
 0x2f1   :  { %567 = vmatmul.bf16.vlgmr.msrb.gmra.mxu1 %v509_v34 }
 0x36e   :  { %v568_v35 = vpop.f32.mrf.mxu1 }
 0x36f   :  { %573 = vst [vmem:[%s1110_s14] sm:$0xff] %v568_v35 }
 0x376   :  { %v570_v36 = vpop.f32.mrf.mxu1 }
 0x377   :  { %574 = vst [vmem:[%s1110_s14 + $0x8] sm:$0xff] %v570_v36 }

// kernel: classifier_for_puzzle_forward.5
= control target key start
LH: loop header
LB: loop body
LE: loop exit
PB: predicated region body
PF: predicated region fallthrough
CT: control target
= control target key end

     0   :  { %s804_s24 = smov 0   ;;  %s909_s0 = inlined_call_operand.vmem [shape: bf16[32,128], index: 0, kind: input, shape index: {}]   ;;  %s910_s1 = inlined_call_operand.vmem [shape: bf16[128,128], index: 1, kind: input, shape index: {}]   ;;  %s911_s2 = inlined_call_operand.vmem [shape: bf16[128,128], index: 2, kind: input, shape index: {}]   ;;  %s912_s3 = inlined_call_operand.vmem [shape: bf16[128,128], index: 3, kind: input, shape index: {}]   ;;  %s913_s4 = inlined_call_operand.vmem [shape: f32[1,128], index: 4, kind: input, shape index: {}]   ;;  %s914_s5 = inlined_call_operand.vmem [shape: f32[1,128], index: 5, kind: input, shape index: {}]   ;;  %s915_s6 = inlined_call_operand.vmem [shape: f32[1,128], index: 6, kind: input, shape index: {}]   ;;  %s916_s7 = inlined_call_operand.vmem [shape: bf16[32,128], index: 7, kind: output, shape index: {}]  }
   0x1 LB: > { %s604_s25 = sadd.s32 4294967295, %s762_s24   ;;  %p608_p0 = scmp.ge.s32.totalorder %s762_s24, 1  ;;  %s762_s24 = sphi %s804_s24, %s17_s24  }
   0x2   : > { %p238_p1 = scmp.lt.s32.totalorder %s762_s24, 3 }
   0x4   : > { %p239_p2 = pnand %p608_p0, %p238_p1 }
   0x5   : > { %s609_s17 = sshll.u32 (!%p239_p2), %s604_s25, 1 }
   0x6   : > { %242 = sbr.rel (%p239_p2) target bundleno = 470 (0x1d6), region = 48  ;;  %p271_p3 = scmp.lt.s32.totalorder (!%p239_p2), %s609_s17, 3 }
   0xb   : > { %v723_v0 = vld [vmem:[%s910_s1 + $0x38] sm:$0xff]  ;;  %v722_v1 = vld [vmem:[%s910_s1 + $0x30] sm:$0xff]  ;;  %v721_v4 = vld [vmem:[%s910_s1 + $0x28] sm:$0xff]  ;;  %s918_s17 = smov (!%p271_p3, %s609_s17), 3 }
   0xc   : > { %358 = vmatpush.bf16.msra.mxu0 %v723_v0  ;;  %v731_v2 = vld [vmem:[%s911_s2 + $0x38] sm:$0xff]  ;;  %v730_v3 = vld [vmem:[%s911_s2 + $0x30] sm:$0xff]  ;;  %v729_v5 = vld [vmem:[%s911_s2 + $0x28] sm:$0xff]  ;;  %s610_s27 = sshll.u32 %s918_s17, 2 }
   0xd   : > { %443 = vmatpush.bf16.msra.mxu1 %v731_v2  ;;  %v720_v6 = vld [vmem:[%s910_s1 + $0x20] sm:$0xff]  ;;  %v719_v8 = vld [vmem:[%s910_s1 + $0x18] sm:$0xff]  ;;  %v718_v9 = vld [vmem:[%s910_s1 + $0x10] sm:$0xff]  ;;  %s274_s9 = scalar_lea.vmem %s909_s0, %s610_s27  ;;  %s280_s23 = scalar_lea.vmem %s916_s7, %s610_s27 }
   0xe   : > { %v728_v7 = vld [vmem:[%s911_s2 + $0x20] sm:$0xff]  ;;  %v717_v10 = vld [vmem:[%s910_s1 + $0x8] sm:$0xff]  ;;  %v727_v13 = vld [vmem:[%s911_s2 + $0x18] sm:$0xff] }
   0xf   : > { %v716_v11 = vld [vmem:[%s910_s1] sm:$0xff]  ;;  %v726_v14 = vld [vmem:[%s911_s2 + $0x10] sm:$0xff]  ;;  %v725_v15 = vld [vmem:[%s911_s2 + $0x8] sm:$0xff] }
  0x10   : > { %359 = vmatpush.bf16.msra.mxu0 %v722_v1  ;;  %v715_v12 = vld [vmem:[%s274_s9] sm:$0xff]  ;;  %v739_v17 = vld [vmem:[%s912_s3 + $0x38] sm:$0xff]  ;;  %v738_v18 = vld [vmem:[%s912_s3 + $0x30] sm:$0xff] }
  0x11   : > { %444 = vmatpush.bf16.msra.mxu1 %v730_v3  ;;  %v724_v16 = vld [vmem:[%s911_s2] sm:$0xff]  ;;  %528 = vmatpush.bf16.msra.mxu2 %v739_v17  ;;  %v737_v19 = vld [vmem:[%s912_s3 + $0x28] sm:$0xff]  ;;  %v735_v29 = vld [vmem:[%s912_s3 + $0x18] sm:$0xff] }
  0x12   : > { %v736_v20 = vld [vmem:[%s912_s3 + $0x20] sm:$0xff]  ;;  %v734_v30 = vld [vmem:[%s912_s3 + $0x10] sm:$0xff]  ;;  %v733_v31 = vld [vmem:[%s912_s3 + $0x8] sm:$0xff] }
  0x13   : > { %v753_v22 = vld [vmem:[%s913_s4] ss:$0 sm:$0xff] }
  0x14   : > { %360 = vmatpush.bf16.msra.mxu0 %v721_v4  ;;  %v732_v32 = vld [vmem:[%s912_s3] sm:$0xff] }
  0x15   : > { %445 = vmatpush.bf16.msra.mxu1 %v729_v5  ;;  %529 = vmatpush.bf16.msra.mxu2 %v738_v18  ;;  %v754_v34 = vld [vmem:[%s914_s5] ss:$0 sm:$0xff] }
  0x16   : > { %v755_v42 = vld [vmem:[%s915_s6] ss:$0 sm:$0xff] }
  0x18   : > { %361 = vmatpush.bf16.msra.mxu0 %v720_v6 }
  0x19   : > { %446 = vmatpush.bf16.msra.mxu1 %v728_v7  ;;  %530 = vmatpush.bf16.msra.mxu2 %v737_v19 }
  0x1c   : > { %362 = vmatpush.bf16.msra.mxu0 %v719_v8 }
  0x1d   : > { %447 = vmatpush.bf16.msra.mxu1 %v727_v13  ;;  %531 = vmatpush.bf16.msra.mxu2 %v736_v20 }
  0x20   : > { %363 = vmatpush.bf16.msra.mxu0 %v718_v9 }
  0x21   : > { %448 = vmatpush.bf16.msra.mxu1 %v726_v14  ;;  %532 = vmatpush.bf16.msra.mxu2 %v735_v29 }
  0x24   : > { %364 = vmatpush.bf16.msra.mxu0 %v717_v10 }
  0x25   : > { %449 = vmatpush.bf16.msra.mxu1 %v725_v15  ;;  %533 = vmatpush.bf16.msra.mxu2 %v734_v30 }
  0x28   : > { %365 = vmatpush.bf16.msra.mxu0 %v716_v11 }
  0x29   : > { %450 = vmatpush.bf16.msra.mxu1 %v724_v16  ;;  %534 = vmatpush.bf16.msra.mxu2 %v733_v31 }
  0x2b   : > { %366 = vmatmul.bf16.vlgmr.msra.gmra.mxu0 %v715_v12 }
  0x2d   : > { %535 = vmatpush.bf16.msra.mxu2 %v732_v32 }
  0xa8   : > { %v367_v21 = vpop.f32.mrf.mxu0 }
  0xa9   : > { %v368_v23 = vadd.f32 %v753_v22, %v367_v21 }
  0xab   : > { %v372_v26 = vmax.f32 %v368_v23, 0.0 }
  0xb0   : > { %v369_v24 = vpop.f32.mrf.mxu0 }
  0xb1   : > { %v370_v25 = vadd.f32 %v753_v22, %v369_v24 }
  0xb3   : > { %v373_v27 = vmax.f32 %v370_v25, 0.0 }
  0xb5   : > { %v374_v28 = vpack.c.bf16 %v373_v27, %v372_v26 }
  0xb7   : > { %451 = vmatmul.bf16.vlgmr.msra.gmra.mxu1 %v374_v28 }
 0x134   : > { %v452_v33 = vpop.f32.mrf.mxu1 }
 0x135   : > { %v453_v35 = vadd.f32 %v754_v34, %v452_v33 }
 0x137   : > { %v457_v38 = vmax.f32 %v453_v35, 0.0 }
 0x13c   : > { %v454_v36 = vpop.f32.mrf.mxu1 }
 0x13d   : > { %v455_v37 = vadd.f32 %v754_v34, %v454_v36 }
 0x13f   : > { %v458_v39 = vmax.f32 %v455_v37, 0.0 }
 0x141   : > { %v459_v40 = vpack.c.bf16 %v458_v39, %v457_v38 }
 0x143   : > { %536 = vmatmul.bf16.vlgmr.msra.gmra.mxu2 %v459_v40 }
 0x1c6   : > { %v537_v41 = vpop.f32.mrf.mxu2 }
 0x1c7   : > { %v538_v43 = vadd.f32 %v755_v42, %v537_v41 }
 0x1c9   : > { %v542_v46 = vmax.f32 %v538_v43, 0.0 }
 0x1ce   : > { %v539_v44 = vpop.f32.mrf.mxu2 }
 0x1cf   : > { %v540_v45 = vadd.f32 %v755_v42, %v539_v44 }
 0x1d1   : > { %v543_v47 = vmax.f32 %v540_v45, 0.0 }
 0x1d3   : > { %v743_v48 = vpack.c.bf16 %v543_v47, %v542_v46 }
 0x1d5   : > { %744 = vst [vmem:[%s280_s23] sm:$0xff] %v743_v48  }
 0x1d6 PF: > { %s17_s24 = sadd.s32 1, %s762_s24  }
 0x1d7   : > { %p14_p4 = scmp.ge.s32.totalorder %s17_s24, 4  }
 0x1d9   :  { %16 = sbr.rel (!%p14_p4) target bundleno = 1 (0x1), region = 78 }

// kernel: classifier_for_puzzle_forward.4
= control target key start
LH: loop header
LB: loop body
LE: loop exit
PB: predicated region body
PF: predicated region fallthrough
CT: control target
= control target key end

     0   :  { %s885_s21 = smov 0   ;;  %s970_s0 = inlined_call_operand.vmem [shape: bf16[128,128], index: 0, kind: input, shape index: {}]   ;;  %s971_s1 = inlined_call_operand.vmem [shape: bf16[128,128], index: 1, kind: input, shape index: {}]   ;;  %s972_s2 = inlined_call_operand.vmem [shape: bf16[128,128], index: 2, kind: input, shape index: {}]   ;;  %s973_s3 = inlined_call_operand.vmem [shape: f32[1,128], index: 3, kind: input, shape index: {}]   ;;  %s974_s4 = inlined_call_operand.vmem [shape: f32[1,128], index: 4, kind: input, shape index: {}]   ;;  %s975_s5 = inlined_call_operand.vmem [shape: bf16[128,128], index: 5, kind: output, shape index: {0}]   ;;  %s976_s6 = inlined_call_operand.vmem [shape: bf16[128,128], index: 6, kind: output, shape index: {1}]  }
   0x1 LB: > { %s657_s22 = sadd.s32 4294967295, %s848_s21   ;;  %p661_p0 = scmp.ge.s32.totalorder %s848_s21, 1  ;;  %s848_s21 = sphi %s885_s21, %s17_s21  }
   0x2   : > { %p216_p1 = scmp.lt.s32.totalorder %s848_s21, 3 }
   0x4   : > { %p217_p2 = pnand %p661_p0, %p216_p1 }
   0x5   : > { %s662_s7 = sshll.u32 (!%p217_p2), %s657_s22, 3 }
   0x6   : > { %220 = sbr.rel (%p217_p2) target bundleno = 356 (0x164), region = 40  ;;  %p252_p3 = scmp.lt.s32.totalorder (!%p217_p2), %s662_s7, 15 }
   0xb   : > { %v761_v0 = vld [vmem:[%s971_s1 + $0x38] sm:$0xff]  ;;  %v760_v1 = vld [vmem:[%s971_s1 + $0x30] sm:$0xff]  ;;  %v759_v2 = vld [vmem:[%s971_s1 + $0x28] sm:$0xff]  ;;  %s978_s7 = smov (!%p252_p3, %s662_s7), 15 }
   0xc   : > { %369 = vmatpush.bf16.msra.mxu0 %v761_v0  ;;  %816 = vmatpush.bf16.msra.mxu2 %v761_v0  ;;  %v758_v3 = vld [vmem:[%s971_s1 + $0x20] sm:$0xff]  ;;  %v757_v4 = vld [vmem:[%s971_s1 + $0x18] sm:$0xff]  ;;  %v756_v6 = vld [vmem:[%s971_s1 + $0x10] sm:$0xff]  ;;  %s920_s18 = sshll.u32 %s978_s7, 2 }
   0xd   : > { %v769_v5 = vld [vmem:[%s972_s2 + $0x38] sm:$0xff]  ;;  %v768_v7 = vld [vmem:[%s972_s2 + $0x30] sm:$0xff]  ;;  %v755_v8 = vld [vmem:[%s971_s1 + $0x8] sm:$0xff]  ;;  %s255_s26 = scalar_lea.vmem %s970_s0, %s920_s18  ;;  %s954_s17 = scalar_lea.vmem %s975_s5, %s920_s18 }
   0xe   : > { %514 = vmatpush.bf16.msra.mxu1 %v769_v5  ;;  %824 = vmatpush.bf16.msra.mxu3 %v769_v5  ;;  %v767_v9 = vld [vmem:[%s972_s2 + $0x28] sm:$0xff]  ;;  %v754_v10 = vld [vmem:[%s971_s1] sm:$0xff]  ;;  %v752_v12 = vld [vmem:[%s255_s26 + $0x10] sm:$0xff]  ;;  %s267_s24 = scalar_lea.vmem %s976_s6, %s920_s18 }
   0xf   : > { %v750_v11 = vld [vmem:[%s255_s26] sm:$0xff]  ;;  %v751_v13 = vld [vmem:[%s255_s26 + $0x8] sm:$0xff]  ;;  %v753_v14 = vld [vmem:[%s255_s26 + $0x18] sm:$0xff] }
  0x10   : > { %370 = vmatpush.bf16.msra.mxu0 %v760_v1  ;;  %817 = vmatpush.bf16.msra.mxu2 %v760_v1  ;;  %v766_v15 = vld [vmem:[%s972_s2 + $0x20] sm:$0xff]  ;;  %v765_v16 = vld [vmem:[%s972_s2 + $0x18] sm:$0xff]  ;;  %v764_v17 = vld [vmem:[%s972_s2 + $0x10] sm:$0xff] }
  0x11   : > { %v763_v18 = vld [vmem:[%s972_s2 + $0x8] sm:$0xff]  ;;  %v762_v19 = vld [vmem:[%s972_s2] sm:$0xff] }
  0x12   : > { %515 = vmatpush.bf16.msra.mxu1 %v768_v7  ;;  %825 = vmatpush.bf16.msra.mxu3 %v768_v7  ;;  %v840_v20 = vld [vmem:[%s973_s3] ss:$0 sm:$0xff] }
  0x14   : > { %371 = vmatpush.bf16.msra.mxu0 %v759_v2  ;;  %818 = vmatpush.bf16.msra.mxu2 %v759_v2 }
  0x16   : > { %516 = vmatpush.bf16.msra.mxu1 %v767_v9  ;;  %826 = vmatpush.bf16.msra.mxu3 %v767_v9 }
  0x18   : > { %372 = vmatpush.bf16.msra.mxu0 %v758_v3  ;;  %819 = vmatpush.bf16.msra.mxu2 %v758_v3 }
  0x1a   : > { %517 = vmatpush.bf16.msra.mxu1 %v766_v15  ;;  %827 = vmatpush.bf16.msra.mxu3 %v766_v15 }
  0x1c   : > { %373 = vmatpush.bf16.msra.mxu0 %v757_v4  ;;  %820 = vmatpush.bf16.msra.mxu2 %v757_v4 }
  0x1e   : > { %518 = vmatpush.bf16.msra.mxu1 %v765_v16  ;;  %828 = vmatpush.bf16.msra.mxu3 %v765_v16 }
  0x20   : > { %374 = vmatpush.bf16.msra.mxu0 %v756_v6  ;;  %821 = vmatpush.bf16.msra.mxu2 %v756_v6  ;;  %v841_v6 = vld [vmem:[%s974_s4] ss:$0 sm:$0xff] }
  0x22   : > { %519 = vmatpush.bf16.msra.mxu1 %v764_v17  ;;  %829 = vmatpush.bf16.msra.mxu3 %v764_v17 }
  0x24   : > { %375 = vmatpush.bf16.msra.mxu0 %v755_v8  ;;  %822 = vmatpush.bf16.msra.mxu2 %v755_v8 }
  0x26   : > { %520 = vmatpush.bf16.msra.mxu1 %v763_v18  ;;  %830 = vmatpush.bf16.msra.mxu3 %v763_v18 }
  0x28   : > { %376 = vmatpush.bf16.msra.mxu0 %v754_v10  ;;  %823 = vmatpush.bf16.msra.mxu2 %v754_v10 }
  0x2a   : > { %521 = vmatpush.bf16.msra.mxu1 %v762_v19  ;;  %831 = vmatpush.bf16.msra.mxu3 %v762_v19 }
  0x2b   : > { %377 = vmatmul.bf16.vlgmr.msra.gmra.mxu0 %v750_v11  ;;  %387 = vmatmul.bf16.vlgmr.msra.gmra.mxu2 %v752_v12 }
  0x3b   : > { %382 = vmatmul.bf16.gmra.mxu0 %v751_v13  ;;  %392 = vmatmul.bf16.gmra.mxu2 %v753_v14 }
  0xa8   : > { %v378_v21 = vpop.f32.mrf.mxu0 }
  0xa9   : > { %v379_v22 = vadd.f32 %v840_v20, %v378_v21 }
  0xab   : > { %v398_v23 = vmax.f32 %v379_v22, 0.0 }
  0xad   : > { %v406_v26 = vpack.c.bf16 %v398_v23, %v398_v23 }
  0xae   : > { %v388_v24 = vpop.f32.mrf.mxu2 }
  0xaf   : > { %v389_v27 = vadd.f32 %v840_v20, %v388_v24  ;;  %v450_v33 = vunpack.c.l.b16 %v406_v26 }
  0xb0   : > { %v380_v25 = vpop.f32.mrf.mxu0 }
  0xb1   : > { %v381_v28 = vadd.f32 %v840_v20, %v380_v25  ;;  %v402_v30 = vmax.f32 %v389_v27, 0.0 }
  0xb3   : > { %v399_v29 = vmax.f32 %v381_v28, 0.0  ;;  %v410_v38 = vpack.c.bf16 %v402_v30, %v402_v30 }
  0xb5   : > { %v407_v31 = vpack.c.bf16 %v399_v29, %v399_v29  ;;  %v773_v32 = vpack.c.bf16 %v399_v29, %v398_v23  ;;  %v454_v45 = vunpack.c.l.b16 %v410_v38 }
  0xb6   : > { %v390_v34 = vpop.f32.mrf.mxu2 }
  0xb7   : > { %774 = vst [vmem:[%s954_s17] sm:$0xff] %v773_v32   ;;  %v391_v35 = vadd.f32 %v840_v20, %v390_v34  ;;  %v451_v36 = vunpack.c.l.b16 %v407_v31 }
  0xb8   : > { %v383_v37 = vpop.f32.mrf.mxu0 }
  0xb9   : > { %v403_v39 = vmax.f32 %v391_v35, 0.0  ;;  %v384_v40 = vadd.f32 %v840_v20, %v383_v37  ;;  %v458_v41 = vpack.c.b16 %v451_v36, %v450_v33 }
  0xbb   : > { %v411_v42 = vpack.c.bf16 %v403_v39, %v403_v39  ;;  %v783_v43 = vpack.c.bf16 %v403_v39, %v402_v30  ;;  %522 = vmatmul.bf16.vlgmr.msra.gmra.mxu1 %v458_v41  ;;  %v400_v44 = vmax.f32 %v384_v40, 0.0 }
  0xbd   : > { %811 = vst [vmem:[%s954_s17 + $0x10] sm:$0xff] %v783_v43   ;;  %v455_v46 = vunpack.c.l.b16 %v411_v42  ;;  %v408_v50 = vpack.c.bf16 %v400_v44, %v400_v44 }
  0xbe   : > { %v393_v47 = vpop.f32.mrf.mxu2 }
  0xbf   : > { %v460_v48 = vpack.c.b16 %v455_v46, %v454_v45  ;;  %v394_v51 = vadd.f32 %v840_v20, %v393_v47  ;;  %v452_v57 = vunpack.c.l.b16 %v408_v50 }
  0xc0   : > { %v385_v49 = vpop.f32.mrf.mxu0 }
  0xc1   : > { %v386_v52 = vadd.f32 %v840_v20, %v385_v49  ;;  %532 = vmatmul.bf16.vlgmr.msra.gmra.mxu3 %v460_v48  ;;  %v404_v54 = vmax.f32 %v394_v51, 0.0 }
  0xc3   : > { %v401_v53 = vmax.f32 %v386_v52, 0.0  ;;  %v412_v61 = vpack.c.bf16 %v404_v54, %v404_v54 }
  0xc5   : > { %v409_v55 = vpack.c.bf16 %v401_v53, %v401_v53  ;;  %v778_v56 = vpack.c.bf16 %v401_v53, %v400_v44  ;;  %v456_v2 = vunpack.c.l.b16 %v412_v61 }
  0xc6   : > { %v395_v58 = vpop.f32.mrf.mxu2 }
  0xc7   : > { %810 = vst [vmem:[%s954_s17 + $0x8] sm:$0xff] %v778_v56   ;;  %v396_v59 = vadd.f32 %v840_v20, %v395_v58  ;;  %v453_v60 = vunpack.c.l.b16 %v409_v55 }
  0xc9   : > { %v405_v62 = vmax.f32 %v396_v59, 0.0  ;;  %v459_v63 = vpack.c.b16 %v453_v60, %v452_v57 }
  0xcb   : > { %v413_v0 = vpack.c.bf16 %v405_v62, %v405_v62  ;;  %v788_v1 = vpack.c.bf16 %v405_v62, %v404_v54  ;;  %527 = vmatmul.bf16.gmra.mxu1 %v459_v63 }
  0xcd   : > { %812 = vst [vmem:[%s954_s17 + $0x18] sm:$0xff] %v788_v1   ;;  %v457_v3 = vunpack.c.l.b16 %v413_v0 }
  0xcf   : > { %v461_v4 = vpack.c.b16 %v457_v3, %v456_v2 }
  0xd1   : > { %537 = vmatmul.bf16.gmra.mxu3 %v461_v4 }
 0x138   : > { %v523_v5 = vpop.f32.mrf.mxu1 }
 0x139   : > { %v524_v7 = vadd.f32 %v841_v6, %v523_v5 }
 0x13b   : > { %v543_v10 = vmax.f32 %v524_v7, 0.0 }
 0x140   : > { %v525_v8 = vpop.f32.mrf.mxu1 }
 0x141   : > { %v526_v9 = vadd.f32 %v841_v6, %v525_v8 }
 0x143   : > { %v544_v11 = vmax.f32 %v526_v9, 0.0 }
 0x144   : > { %v533_v12 = vpop.f32.mrf.mxu3 }
 0x145   : > { %v793_v13 = vpack.c.bf16 %v544_v11, %v543_v10  ;;  %v534_v15 = vadd.f32 %v841_v6, %v533_v12 }
 0x147   : > { %794 = vst [vmem:[%s267_s24] sm:$0xff] %v793_v13   ;;  %v547_v18 = vmax.f32 %v534_v15, 0.0 }
 0x148   : > { %v528_v14 = vpop.f32.mrf.mxu1 }
 0x149   : > { %v529_v19 = vadd.f32 %v841_v6, %v528_v14 }
 0x14b   : > { %v545_v24 = vmax.f32 %v529_v19, 0.0 }
 0x14c   : > { %v535_v16 = vpop.f32.mrf.mxu3 }
 0x14d   : > { %v536_v17 = vadd.f32 %v841_v6, %v535_v16 }
 0x14f   : > { %v548_v20 = vmax.f32 %v536_v17, 0.0 }
 0x150   : > { %v530_v21 = vpop.f32.mrf.mxu1 }
 0x151   : > { %v803_v22 = vpack.c.bf16 %v548_v20, %v547_v18  ;;  %v531_v23 = vadd.f32 %v841_v6, %v530_v21 }
 0x153   : > { %814 = vst [vmem:[%s267_s24 + $0x10] sm:$0xff] %v803_v22   ;;  %v546_v25 = vmax.f32 %v531_v23, 0.0 }
 0x154   : > { %v538_v26 = vpop.f32.mrf.mxu3 }
 0x155   : > { %v798_v27 = vpack.c.bf16 %v546_v25, %v545_v24  ;;  %v539_v28 = vadd.f32 %v841_v6, %v538_v26 }
 0x157   : > { %813 = vst [vmem:[%s267_s24 + $0x8] sm:$0xff] %v798_v27   ;;  %v549_v31 = vmax.f32 %v539_v28, 0.0 }
 0x15c   : > { %v540_v29 = vpop.f32.mrf.mxu3 }
 0x15d   : > { %v541_v30 = vadd.f32 %v841_v6, %v540_v29 }
 0x15f   : > { %v550_v32 = vmax.f32 %v541_v30, 0.0 }
 0x161   : > { %v808_v33 = vpack.c.bf16 %v550_v32, %v549_v31 }
 0x163   : > { %815 = vst [vmem:[%s267_s24 + $0x18] sm:$0xff] %v808_v33  }
 0x164 PF: > { %s17_s21 = sadd.s32 1, %s848_s21  }
 0x165   : > { %p14_p4 = scmp.ge.s32.totalorder %s17_s21, 4  }
 0x167   :  { %16 = sbr.rel (!%p14_p4) target bundleno = 1 (0x1), region = 82 }

</bundles_post_ra>
